<compile_context>
chip_gen: v7x
topology: tpu7x:2x2x1
jax: 0.10.0
libtpu: 0.0.40
codegen_flags: <defaults>
</compile_context>

<pallas_src>
import functools

import jax
import jax.numpy as jnp
from jax import lax
from jax.experimental import pallas as pl
from jax.experimental.pallas import tpu as pltpu


# --------------------------------- kernel ------------------------------------

def _iam_kernel(qs_ref, qa_ref, fe_ref,
                wq1_ref, wkv1_ref, wq2_ref, wkv2_ref,
                g1_ref, b1_ref, g2_ref, b2_ref, g3_ref, b3_ref,
                wf1_ref, bf1_ref, wf2_ref, bf2_ref,
                out_ref,
                *, lenq, len_a, len_f, n_heads, d_k, d_v, iterations):
    f32 = jnp.float32
    bf16 = jnp.bfloat16
    nh, dk = n_heads, d_k
    dvh = d_v // nh
    eps = 1e-5

    # Per-batch activations (one batch element per program).
    Ql = qs_ref[0].astype(f32)                       # (lenq, d_in)
    Qa = qa_ref[0]                                   # (len_a, d_in)
    Fe = fe_ref[0]                                   # (len_f, d_v)

    # ---- hoisted: K/V projections (Qa / Fe constant across iterations).
    #      One fused K|V matmul each; per-head slices pre-computed once.
    def project_kv(x, wkv):
        kv = jnp.dot(x.astype(bf16), wkv, preferred_element_type=f32)
        k = kv[:, :nh * dk].astype(bf16)             # (len_k, nh*dk)
        v = kv[:, nh * dk:].astype(bf16)             # (len_k, d_v)
        k_heads = [k[:, h * dk:(h + 1) * dk] for h in range(nh)]      # (len_k, dk)
        v_heads = [v[:, h * dvh:(h + 1) * dvh] for h in range(nh)]    # (len_k, dvh)
        return k_heads, v_heads

    k1_heads, v1_heads = project_kv(Qa, wkv1_ref[...])
    k2_heads, v2_heads = project_kv(Fe, wkv2_ref[...])

    # ---- hoisted parameter loads (loop-invariant).
    g1, b1 = g1_ref[...], b1_ref[...]
    g2, b2 = g2_ref[...], b2_ref[...]
    g3, b3 = g3_ref[...], b3_ref[...]
    wq1, wq2 = wq1_ref[...], wq2_ref[...]            # bf16, 1/sqrt(d_k) folded in
    wf1, wf2 = wf1_ref[...], wf2_ref[...]            # bf16
    fbias1, fbias2 = bf1_ref[...], bf2_ref[...]      # f32 (1, d)

    def layernorm(x, g, b):
        # PyTorch nn.LayerNorm([lenq, d]): single mean/var over the whole
        # (lenq, d) slab per batch element; elementwise affine gamma/beta of
        # shape (lenq, d).  Single-pass: var = E[x^2] - mu^2.
        inv_n = 1.0 / (x.shape[0] * x.shape[1])
        s1 = jnp.sum(jnp.sum(x, axis=1, keepdims=True), axis=0, keepdims=True)
        s2 = jnp.sum(jnp.sum(x * x, axis=1, keepdims=True), axis=0, keepdims=True)
        mu = s1 * inv_n
        var = s2 * inv_n - mu * mu
        return (x - mu) * lax.rsqrt(var + eps) * g + b

    def mha(x, wq, k_heads, v_heads):
        # x: (lenq, d_x) f32.  Per-head 2-D matmuls (no head-mask FLOP waste).
        q = jnp.dot(x.astype(bf16), wq, preferred_element_type=f32)   # (lenq, nh*dk)
        q16 = q.astype(bf16)
        outs = []
        for h in range(nh):
            qh = q16[:, h * dk:(h + 1) * dk]                          # (lenq, dk)
            # scores: contract q's last dim with k's last dim (no explicit k.T)
            s = lax.dot_general(qh, k_heads[h],
                                dimension_numbers=(((1,), (1,)), ((), ())),
                                preferred_element_type=f32)           # (lenq, len_k)
            s = s - jnp.max(s, axis=-1, keepdims=True)
            p = jnp.exp(s)
            p = p * pl.reciprocal(jnp.sum(p, axis=-1, keepdims=True), approx=True)
            outs.append(jnp.dot(p.astype(bf16), v_heads[h],
                                preferred_element_type=f32))          # (lenq, dvh)
        return jnp.concatenate(outs, axis=-1)                         # (lenq, d_v)

    for it in range(iterations):                     # small static unroll
        Ql_norm = layernorm(Ql, g1, b1)
        Qla = mha(Ql_norm, wq1, k1_heads, v1_heads) + Ql
        Qla_norm = layernorm(Qla, g2, b2)
        Qlaf = mha(Qla_norm, wq2, k2_heads, v2_heads) + Qla
        Qlaf_norm = layernorm(Qlaf, g3, b3)
        hid = jnp.dot(Qlaf_norm.astype(bf16), wf1,
                      preferred_element_type=f32) + fbias1
        hid = jnp.maximum(hid, 0.0)
        Ql = jnp.dot(hid.astype(bf16), wf2,
                     preferred_element_type=f32) + fbias2 + Qlaf
        out_ref[it, 0, :, :] = Ql.astype(out_ref.dtype)


# -------------------------------- wrapper ------------------------------------

def iterative_adaptation(Qs, Qa, Fe, params, *, n_heads, d_k, d_v, iterations):
    B, lenq, d_in = Qs.shape
    _, len_a, _ = Qa.shape
    _, len_f, _ = Fe.shape
    assert d_in == d_v, "residual Qla = mha1(...) + Ql requires d_in == d_v"
    assert d_v % n_heads == 0

    bf16 = jnp.bfloat16
    scale = 1.0 / (d_k ** 0.5)

    # Fold 1/sqrt(d_k) into the query weights; fuse K|V weights; cast all
    # matmul weights to bf16 (f32 accumulation happens inside the kernel).
    wq1 = (params['wq1'] * scale).astype(bf16)
    wq2 = (params['wq2'] * scale).astype(bf16)
    wkv1 = jnp.concatenate([params['wk1'], params['wv1']], axis=1).astype(bf16)
    wkv2 = jnp.concatenate([params['wk2'], params['wv2']], axis=1).astype(bf16)
    wf1 = params['wf1'].astype(bf16)
    wf2 = params['wf2'].astype(bf16)

    args = [Qs, Qa, Fe,
            wq1, wkv1, wq2, wkv2,
            params['g1'], params['b1'], params['g2'], params['b2'],
            params['g3'], params['b3'],
            wf1, params['bf1'], wf2, params['bf2']]

    def batch_spec(arr):
        nd = arr.ndim
        return pl.BlockSpec((1,) + arr.shape[1:],
                            lambda b, _nd=nd: (b,) + (0,) * (_nd - 1))

    def full_spec(arr):
        nd = arr.ndim
        return pl.BlockSpec(arr.shape, lambda b, _nd=nd: (0,) * _nd)

    in_specs = ([batch_spec(Qs), batch_spec(Qa), batch_spec(Fe)]
                + [full_spec(a) for a in args[3:]])

    kernel = functools.partial(
        _iam_kernel, lenq=lenq, len_a=len_a, len_f=len_f,
        n_heads=n_heads, d_k=d_k, d_v=d_v, iterations=iterations)

    out = pl.pallas_call(
        kernel,
        out_shape=jax.ShapeDtypeStruct((iterations, B, lenq, d_v), jnp.float32),
        grid=(B,),
        in_specs=in_specs,
        out_specs=pl.BlockSpec((iterations, 1, lenq, d_v), lambda b: (0, b, 0, 0)),
        compiler_params=pltpu.CompilerParams(
            dimension_semantics=("parallel",),
            vmem_limit_bytes=32 * 1024 * 1024),
    )(*args)

    # Matches the PyTorch module: list of Ql per iteration, each (B, lenq, d_v).
    return [out[i] for i in range(iterations)]


# --------------------------- pure-JAX reference -------------------------------

def reference_forward(Qs, Qa, Fe, params, *, n_heads, d_k, d_v, iterations):
    nh, dk = n_heads, d_k
    dvh = d_v // nh
    eps = 1e-5

    def mha(xq, xk, wq, wk, wv):
        B, lq, _ = xq.shape
        lk = xk.shape[1]
        q = (xq @ wq).reshape(B, lq, nh, dk).transpose(0, 2, 1, 3)
        k = (xk @ wk).reshape(B, lk, nh, dk).transpose(0, 2, 1, 3)
        v = (xk @ wv).reshape(B, lk, nh, dvh).transpose(0, 2, 1, 3)
        attn = jnp.einsum('bhqd,bhkd->bhqk', q, k) / (dk ** 0.5)
        attn = jax.nn.softmax(attn, axis=-1)
        out = jnp.einsum('bhqk,bhkd->bhqd', attn, v)
        return out.transpose(0, 2, 1, 3).reshape(B, lq, nh * dvh)

    def ln(x, g, b):
        mu = jnp.mean(x, axis=(1, 2), keepdims=True)
        var = jnp.mean((x - mu) ** 2, axis=(1, 2), keepdims=True)
        return (x - mu) / jnp.sqrt(var + eps) * g[None] + b[None]

    Ql = Qs
    outs = []
    for _ in range(iterations):
        Qln = ln(Ql, params['g1'], params['b1'])
        Qla = mha(Qln, Qa, params['wq1'], params['wk1'], params['wv1']) + Ql
        Qlan = ln(Qla, params['g2'], params['b2'])
        Qlaf = mha(Qlan, Fe, params['wq2'], params['wk2'], params['wv2']) + Qla
        Qlafn = ln(Qlaf, params['g3'], params['b3'])
        h = jnp.maximum(Qlafn @ params['wf1'] + params['bf1'], 0.0)
        Ql = h @ params['wf2'] + params['bf2'] + Qlaf
        outs.append(Ql)
    return outs


# ------------------------- deterministic parameters --------------------------

def make_params(key, n_heads, d_in, d_k, d_v, d_hidden, lenq):
    ks = jax.random.split(key, 8)
    s = 0.05
    # Linear weights pre-transposed to (in, out) so the kernel computes x @ W.
    return {
        'wq1': jax.random.normal(ks[0], (d_in, n_heads * d_k), jnp.float32) * s,
        'wk1': jax.random.normal(ks[1], (d_in, n_heads * d_k), jnp.float32) * s,
        'wv1': jax.random.normal(ks[2], (d_in, d_v), jnp.float32) * s,
        'wq2': jax.random.normal(ks[3], (d_v, n_heads * d_k), jnp.float32) * s,
        'wk2': jax.random.normal(ks[4], (d_v, n_heads * d_k), jnp.float32) * s,
        'wv2': jax.random.normal(ks[5], (d_v, d_v), jnp.float32) * s,
        'g1': jnp.ones((lenq, d_in), jnp.float32),
        'b1': jnp.zeros((lenq, d_in), jnp.float32),
        'g2': jnp.ones((lenq, d_v), jnp.float32),
        'b2': jnp.zeros((lenq, d_v), jnp.float32),
        'g3': jnp.ones((lenq, d_v), jnp.float32),
        'b3': jnp.zeros((lenq, d_v), jnp.float32),
        'wf1': jax.random.normal(ks[6], (d_v, d_hidden), jnp.float32) * s,
        'bf1': jnp.zeros((1, d_hidden), jnp.float32),
        'wf2': jax.random.normal(ks[7], (d_hidden, d_v), jnp.float32) * s,
        'bf2': jnp.zeros((1, d_v), jnp.float32),
    }


# ----------------------------------- main -------------------------------------

if __name__ == "__main__":
    B, lenq, len_a, len_f = 2, 8, 8, 8
    n_heads, d_in, d_k, d_v, d_hidden = 2, 32, 16, 32, 64
    iterations = 2

    key = jax.random.PRNGKey(0)
    k_qs, k_qa, k_fe, k_p = jax.random.split(key, 4)
    Qs = jax.random.normal(k_qs, (B, lenq, d_in), jnp.float32)
    Qa = jax.random.normal(k_qa, (B, len_a, d_in), jnp.float32)
    Fe = jax.random.normal(k_fe, (B, len_f, d_v), jnp.float32)
    params = make_params(k_p, n_heads, d_in, d_k, d_v, d_hidden, lenq)

    outs = iterative_adaptation(Qs, Qa, Fe, params,
                                n_heads=n_heads, d_k=d_k, d_v=d_v,
                                iterations=iterations)
    jax.block_until_ready(outs)
    assert len(outs) == iterations and outs[0].shape == (B, lenq, d_v)

    # Correctness check against a pure-JAX f32 reference (bf16 matmuls + approx
    # reciprocal in the kernel -> loose tolerance).
    refs = reference_forward(Qs, Qa, Fe, params,
                             n_heads=n_heads, d_k=d_k, d_v=d_v,
                             iterations=iterations)
    max_err = max(float(jnp.max(jnp.abs(o - r))) for o, r in zip(outs, refs))
    assert max_err < 5e-2, f"kernel deviates from reference: max_err={max_err}"

    print("KERNEL_OK")
</pallas_src>

<mosaic_0001>
module attributes {stable_mosaic.version = 11 : i64} {
  func.func @_iam_kernel(%arg0: i32, %arg1: memref<1x8x32xf32, #tpu.memory_space<vmem>>, %arg2: memref<1x8x32xf32, #tpu.memory_space<vmem>>, %arg3: memref<1x8x32xf32, #tpu.memory_space<vmem>>, %arg4: memref<32x32xbf16, #tpu.memory_space<vmem>>, %arg5: memref<32x64xbf16, #tpu.memory_space<vmem>>, %arg6: memref<32x32xbf16, #tpu.memory_space<vmem>>, %arg7: memref<32x64xbf16, #tpu.memory_space<vmem>>, %arg8: memref<8x32xf32, #tpu.memory_space<vmem>>, %arg9: memref<8x32xf32, #tpu.memory_space<vmem>>, %arg10: memref<8x32xf32, #tpu.memory_space<vmem>>, %arg11: memref<8x32xf32, #tpu.memory_space<vmem>>, %arg12: memref<8x32xf32, #tpu.memory_space<vmem>>, %arg13: memref<8x32xf32, #tpu.memory_space<vmem>>, %arg14: memref<32x64xbf16, #tpu.memory_space<vmem>>, %arg15: memref<1x64xf32, #tpu.memory_space<vmem>>, %arg16: memref<64x32xbf16, #tpu.memory_space<vmem>>, %arg17: memref<1x32xf32, #tpu.memory_space<vmem>>, %arg18: memref<2x1x8x32xf32, #tpu.memory_space<vmem>>) attributes {dimension_semantics = [#tpu.dimension_semantics<parallel>], iteration_bounds = array<i64: 2>, scalar_prefetch = 0 : i64, scratch_operands = 0 : i64, tpu.core_type = #tpu.core_type<tc>, window_params = [{transform_indices = @transform_0, window_bounds = array<i64: 1, 8, 32>}, {transform_indices = @transform_1, window_bounds = array<i64: 1, 8, 32>}, {transform_indices = @transform_2, window_bounds = array<i64: 1, 8, 32>}, {pipeline_mode = #tpu.pipeline_mode<synchronous>, transform_indices = @transform_3, window_bounds = array<i64: 32, 32>}, {pipeline_mode = #tpu.pipeline_mode<synchronous>, transform_indices = @transform_4, window_bounds = array<i64: 32, 64>}, {pipeline_mode = #tpu.pipeline_mode<synchronous>, transform_indices = @transform_5, window_bounds = array<i64: 32, 32>}, {pipeline_mode = #tpu.pipeline_mode<synchronous>, transform_indices = @transform_6, window_bounds = array<i64: 32, 64>}, {pipeline_mode = #tpu.pipeline_mode<synchronous>, transform_indices = @transform_7, window_bounds = array<i64: 8, 32>}, {pipeline_mode = #tpu.pipeline_mode<synchronous>, transform_indices = @transform_8, window_bounds = array<i64: 8, 32>}, {pipeline_mode = #tpu.pipeline_mode<synchronous>, transform_indices = @transform_9, window_bounds = array<i64: 8, 32>}, {pipeline_mode = #tpu.pipeline_mode<synchronous>, transform_indices = @transform_10, window_bounds = array<i64: 8, 32>}, {pipeline_mode = #tpu.pipeline_mode<synchronous>, transform_indices = @transform_11, window_bounds = array<i64: 8, 32>}, {pipeline_mode = #tpu.pipeline_mode<synchronous>, transform_indices = @transform_12, window_bounds = array<i64: 8, 32>}, {pipeline_mode = #tpu.pipeline_mode<synchronous>, transform_indices = @transform_13, window_bounds = array<i64: 32, 64>}, {pipeline_mode = #tpu.pipeline_mode<synchronous>, transform_indices = @transform_14, window_bounds = array<i64: 1, 64>}, {pipeline_mode = #tpu.pipeline_mode<synchronous>, transform_indices = @transform_15, window_bounds = array<i64: 64, 32>}, {pipeline_mode = #tpu.pipeline_mode<synchronous>, transform_indices = @transform_16, window_bounds = array<i64: 1, 32>}, {transform_indices = @transform_17, window_bounds = array<i64: 2, 1, 8, 32>}]} {
    %c0 = arith.constant 0 : index
    %c0_0 = arith.constant 0 : index
    %c0_1 = arith.constant 0 : index
    %0 = vector.load %arg1[%c0, %c0_0, %c0_1] : memref<1x8x32xf32, #tpu.memory_space<vmem>>, vector<1x8x32xf32>
    %1 = vector.shape_cast %0 : vector<1x8x32xf32> to vector<8x32xf32>
    %c0_2 = arith.constant 0 : index
    %c0_3 = arith.constant 0 : index
    %c0_4 = arith.constant 0 : index
    %2 = vector.load %arg2[%c0_2, %c0_3, %c0_4] : memref<1x8x32xf32, #tpu.memory_space<vmem>>, vector<1x8x32xf32>
    %3 = vector.shape_cast %2 : vector<1x8x32xf32> to vector<8x32xf32>
    %c0_5 = arith.constant 0 : index
    %c0_6 = arith.constant 0 : index
    %c0_7 = arith.constant 0 : index
    %4 = vector.load %arg3[%c0_5, %c0_6, %c0_7] : memref<1x8x32xf32, #tpu.memory_space<vmem>>, vector<1x8x32xf32>
    %5 = vector.shape_cast %4 : vector<1x8x32xf32> to vector<8x32xf32>
    %c0_8 = arith.constant 0 : index
    %c0_9 = arith.constant 0 : index
    %6 = vector.load %arg5[%c0_8, %c0_9] : memref<32x64xbf16, #tpu.memory_space<vmem>>, vector<32x64xbf16>
    %7 = arith.truncf %3 : vector<8x32xf32> to vector<8x32xbf16>
    %cst = arith.constant dense<0.000000e+00> : vector<8x64xf32>
    %8 = tpu.matmul %7, %6, %cst {dimension_numbers = #tpu.dot_dimension_numbers<[1], [0], [0], [1], [0, 0, 1, 1], [], []>} : vector<8x32xbf16>, vector<32x64xbf16>, vector<8x64xf32> -> vector<8x64xf32>
    %9 = vector.extract_strided_slice %8 {offsets = [0, 0], sizes = [8, 32], strides = [1, 1]} : vector<8x64xf32> to vector<8x32xf32>
    %10 = arith.truncf %9 : vector<8x32xf32> to vector<8x32xbf16>
    %11 = vector.extract_strided_slice %8 {offsets = [0, 32], sizes = [8, 32], strides = [1, 1]} : vector<8x64xf32> to vector<8x32xf32>
    %12 = arith.truncf %11 : vector<8x32xf32> to vector<8x32xbf16>
    %13 = vector.extract_strided_slice %10 {offsets = [0, 0], sizes = [8, 16], strides = [1, 1]} : vector<8x32xbf16> to vector<8x16xbf16>
    %14 = vector.extract_strided_slice %10 {offsets = [0, 16], sizes = [8, 16], strides = [1, 1]} : vector<8x32xbf16> to vector<8x16xbf16>
    %15 = vector.extract_strided_slice %12 {offsets = [0, 0], sizes = [8, 16], strides = [1, 1]} : vector<8x32xbf16> to vector<8x16xbf16>
    %16 = vector.extract_strided_slice %12 {offsets = [0, 16], sizes = [8, 16], strides = [1, 1]} : vector<8x32xbf16> to vector<8x16xbf16>
    %c0_10 = arith.constant 0 : index
    %c0_11 = arith.constant 0 : index
    %17 = vector.load %arg7[%c0_10, %c0_11] : memref<32x64xbf16, #tpu.memory_space<vmem>>, vector<32x64xbf16>
    %18 = arith.truncf %5 : vector<8x32xf32> to vector<8x32xbf16>
    %cst_12 = arith.constant dense<0.000000e+00> : vector<8x64xf32>
    %19 = tpu.matmul %18, %17, %cst_12 {dimension_numbers = #tpu.dot_dimension_numbers<[1], [0], [0], [1], [0, 0, 1, 1], [], []>} : vector<8x32xbf16>, vector<32x64xbf16>, vector<8x64xf32> -> vector<8x64xf32>
    %20 = vector.extract_strided_slice %19 {offsets = [0, 0], sizes = [8, 32], strides = [1, 1]} : vector<8x64xf32> to vector<8x32xf32>
    %21 = arith.truncf %20 : vector<8x32xf32> to vector<8x32xbf16>
    %22 = vector.extract_strided_slice %19 {offsets = [0, 32], sizes = [8, 32], strides = [1, 1]} : vector<8x64xf32> to vector<8x32xf32>
    %23 = arith.truncf %22 : vector<8x32xf32> to vector<8x32xbf16>
    %24 = vector.extract_strided_slice %21 {offsets = [0, 0], sizes = [8, 16], strides = [1, 1]} : vector<8x32xbf16> to vector<8x16xbf16>
    %25 = vector.extract_strided_slice %21 {offsets = [0, 16], sizes = [8, 16], strides = [1, 1]} : vector<8x32xbf16> to vector<8x16xbf16>
    %26 = vector.extract_strided_slice %23 {offsets = [0, 0], sizes = [8, 16], strides = [1, 1]} : vector<8x32xbf16> to vector<8x16xbf16>
    %27 = vector.extract_strided_slice %23 {offsets = [0, 16], sizes = [8, 16], strides = [1, 1]} : vector<8x32xbf16> to vector<8x16xbf16>
    %c0_13 = arith.constant 0 : index
    %c0_14 = arith.constant 0 : index
    %28 = vector.load %arg8[%c0_13, %c0_14] : memref<8x32xf32, #tpu.memory_space<vmem>>, vector<8x32xf32>
    %c0_15 = arith.constant 0 : index
    %c0_16 = arith.constant 0 : index
    %29 = vector.load %arg9[%c0_15, %c0_16] : memref<8x32xf32, #tpu.memory_space<vmem>>, vector<8x32xf32>
    %c0_17 = arith.constant 0 : index
    %c0_18 = arith.constant 0 : index
    %30 = vector.load %arg10[%c0_17, %c0_18] : memref<8x32xf32, #tpu.memory_space<vmem>>, vector<8x32xf32>
    %c0_19 = arith.constant 0 : index
    %c0_20 = arith.constant 0 : index
    %31 = vector.load %arg11[%c0_19, %c0_20] : memref<8x32xf32, #tpu.memory_space<vmem>>, vector<8x32xf32>
    %c0_21 = arith.constant 0 : index
    %c0_22 = arith.constant 0 : index
    %32 = vector.load %arg12[%c0_21, %c0_22] : memref<8x32xf32, #tpu.memory_space<vmem>>, vector<8x32xf32>
    %c0_23 = arith.constant 0 : index
    %c0_24 = arith.constant 0 : index
    %33 = vector.load %arg13[%c0_23, %c0_24] : memref<8x32xf32, #tpu.memory_space<vmem>>, vector<8x32xf32>
    %c0_25 = arith.constant 0 : index
    %c0_26 = arith.constant 0 : index
    %34 = vector.load %arg4[%c0_25, %c0_26] : memref<32x32xbf16, #tpu.memory_space<vmem>>, vector<32x32xbf16>
    %c0_27 = arith.constant 0 : index
    %c0_28 = arith.constant 0 : index
    %35 = vector.load %arg6[%c0_27, %c0_28] : memref<32x32xbf16, #tpu.memory_space<vmem>>, vector<32x32xbf16>
    %c0_29 = arith.constant 0 : index
    %c0_30 = arith.constant 0 : index
    %36 = vector.load %arg14[%c0_29, %c0_30] : memref<32x64xbf16, #tpu.memory_space<vmem>>, vector<32x64xbf16>
    %c0_31 = arith.constant 0 : index
    %c0_32 = arith.constant 0 : index
    %37 = vector.load %arg16[%c0_31, %c0_32] : memref<64x32xbf16, #tpu.memory_space<vmem>>, vector<64x32xbf16>
    %c0_33 = arith.constant 0 : index
    %c0_34 = arith.constant 0 : index
    %38 = vector.load %arg15[%c0_33, %c0_34] : memref<1x64xf32, #tpu.memory_space<vmem>>, vector<1x64xf32>
    %c0_35 = arith.constant 0 : index
    %c0_36 = arith.constant 0 : index
    %39 = vector.load %arg17[%c0_35, %c0_36] : memref<1x32xf32, #tpu.memory_space<vmem>>, vector<1x32xf32>
    %cst_37 = arith.constant dense<0.000000e+00> : vector<8xf32>
    %40 = vector.multi_reduction <add>, %1, %cst_37 [1] : vector<8x32xf32> to vector<8xf32>
    %41 = vector.shape_cast %40 : vector<8xf32> to vector<8x1xf32>
    %cst_38 = arith.constant dense<0.000000e+00> : vector<1xf32>
    %42 = vector.multi_reduction <add>, %41, %cst_38 [0] : vector<8x1xf32> to vector<1xf32>
    %43 = vector.shape_cast %42 : vector<1xf32> to vector<1x1xf32>
    %44 = arith.mulf %1, %1 : vector<8x32xf32>
    %cst_39 = arith.constant dense<0.000000e+00> : vector<8xf32>
    %45 = vector.multi_reduction <add>, %44, %cst_39 [1] : vector<8x32xf32> to vector<8xf32>
    %46 = vector.shape_cast %45 : vector<8xf32> to vector<8x1xf32>
    %cst_40 = arith.constant dense<0.000000e+00> : vector<1xf32>
    %47 = vector.multi_reduction <add>, %46, %cst_40 [0] : vector<8x1xf32> to vector<1xf32>
    %48 = vector.shape_cast %47 : vector<1xf32> to vector<1x1xf32>
    %cst_41 = arith.constant 3.906250e-03 : f32
    %49 = vector.broadcast %cst_41 : f32 to vector<1x1xf32>
    %50 = arith.mulf %43, %49 : vector<1x1xf32>
    %cst_42 = arith.constant 3.906250e-03 : f32
    %51 = vector.broadcast %cst_42 : f32 to vector<1x1xf32>
    %52 = arith.mulf %48, %51 : vector<1x1xf32>
    %53 = arith.mulf %50, %50 : vector<1x1xf32>
    %54 = arith.subf %52, %53 : vector<1x1xf32>
    %55 = vector.broadcast %50 : vector<1x1xf32> to vector<8x32xf32>
    %56 = arith.subf %1, %55 : vector<8x32xf32>
    %cst_43 = arith.constant 9.99999974E-6 : f32
    %57 = vector.broadcast %cst_43 : f32 to vector<1x1xf32>
    %58 = arith.addf %54, %57 : vector<1x1xf32>
    %59 = math.rsqrt %58 : vector<1x1xf32>
    %60 = vector.broadcast %59 : vector<1x1xf32> to vector<8x32xf32>
    %61 = arith.mulf %56, %60 : vector<8x32xf32>
    %62 = arith.mulf %61, %28 : vector<8x32xf32>
    %63 = arith.addf %62, %29 : vector<8x32xf32>
    %64 = arith.truncf %63 : vector<8x32xf32> to vector<8x32xbf16>
    %cst_44 = arith.constant dense<0.000000e+00> : vector<8x32xf32>
    %65 = tpu.matmul %64, %34, %cst_44 {dimension_numbers = #tpu.dot_dimension_numbers<[1], [0], [0], [1], [0, 0, 1, 1], [], []>} : vector<8x32xbf16>, vector<32x32xbf16>, vector<8x32xf32> -> vector<8x32xf32>
    %66 = arith.truncf %65 : vector<8x32xf32> to vector<8x32xbf16>
    %67 = vector.extract_strided_slice %66 {offsets = [0, 0], sizes = [8, 16], strides = [1, 1]} : vector<8x32xbf16> to vector<8x16xbf16>
    %cst_45 = arith.constant dense<0.000000e+00> : vector<8x8xf32>
    %68 = tpu.matmul %67, %13, %cst_45 {dimension_numbers = #tpu.dot_dimension_numbers<[1], [1], [0], [0], [0, 0, 1, 0], [], []>} : vector<8x16xbf16>, vector<8x16xbf16>, vector<8x8xf32> -> vector<8x8xf32>
    %cst_46 = arith.constant dense<0xFF800000> : vector<8xf32>
    %69 = vector.multi_reduction <maximumf>, %68, %cst_46 [1] : vector<8x8xf32> to vector<8xf32>
    %70 = vector.shape_cast %69 : vector<8xf32> to vector<8x1xf32>
    %71 = vector.broadcast %70 : vector<8x1xf32> to vector<8x8xf32>
    %72 = arith.subf %68, %71 : vector<8x8xf32>
    %73 = math.exp %72 : vector<8x8xf32>
    %cst_47 = arith.constant dense<0.000000e+00> : vector<8xf32>
    %74 = vector.multi_reduction <add>, %73, %cst_47 [1] : vector<8x8xf32> to vector<8xf32>
    %75 = vector.shape_cast %74 : vector<8xf32> to vector<8x1xf32>
    %76 = tpu.reciprocal %75 {approx = true} : vector<8x1xf32> -> vector<8x1xf32>
    %77 = vector.broadcast %76 : vector<8x1xf32> to vector<8x8xf32>
    %78 = arith.mulf %73, %77 : vector<8x8xf32>
    %79 = arith.truncf %78 : vector<8x8xf32> to vector<8x8xbf16>
    %cst_48 = arith.constant dense<0.000000e+00> : vector<8x16xf32>
    %80 = tpu.matmul %79, %15, %cst_48 {dimension_numbers = #tpu.dot_dimension_numbers<[1], [0], [0], [1], [0, 0, 1, 1], [], []>} : vector<8x8xbf16>, vector<8x16xbf16>, vector<8x16xf32> -> vector<8x16xf32>
    %81 = vector.extract_strided_slice %66 {offsets = [0, 16], sizes = [8, 16], strides = [1, 1]} : vector<8x32xbf16> to vector<8x16xbf16>
    %cst_49 = arith.constant dense<0.000000e+00> : vector<8x8xf32>
    %82 = tpu.matmul %81, %14, %cst_49 {dimension_numbers = #tpu.dot_dimension_numbers<[1], [1], [0], [0], [0, 0, 1, 0], [], []>} : vector<8x16xbf16>, vector<8x16xbf16>, vector<8x8xf32> -> vector<8x8xf32>
    %cst_50 = arith.constant dense<0xFF800000> : vector<8xf32>
    %83 = vector.multi_reduction <maximumf>, %82, %cst_50 [1] : vector<8x8xf32> to vector<8xf32>
    %84 = vector.shape_cast %83 : vector<8xf32> to vector<8x1xf32>
    %85 = vector.broadcast %84 : vector<8x1xf32> to vector<8x8xf32>
    %86 = arith.subf %82, %85 : vector<8x8xf32>
    %87 = math.exp %86 : vector<8x8xf32>
    %cst_51 = arith.constant dense<0.000000e+00> : vector<8xf32>
    %88 = vector.multi_reduction <add>, %87, %cst_51 [1] : vector<8x8xf32> to vector<8xf32>
    %89 = vector.shape_cast %88 : vector<8xf32> to vector<8x1xf32>
    %90 = tpu.reciprocal %89 {approx = true} : vector<8x1xf32> -> vector<8x1xf32>
    %91 = vector.broadcast %90 : vector<8x1xf32> to vector<8x8xf32>
    %92 = arith.mulf %87, %91 : vector<8x8xf32>
    %93 = arith.truncf %92 : vector<8x8xf32> to vector<8x8xbf16>
    %cst_52 = arith.constant dense<0.000000e+00> : vector<8x16xf32>
    %94 = tpu.matmul %93, %16, %cst_52 {dimension_numbers = #tpu.dot_dimension_numbers<[1], [0], [0], [1], [0, 0, 1, 1], [], []>} : vector<8x8xbf16>, vector<8x16xbf16>, vector<8x16xf32> -> vector<8x16xf32>
    %95 = tpu.concatenate %80, %94 in 1 : vector<8x16xf32>, vector<8x16xf32> -> vector<8x32xf32>
    %96 = arith.addf %95, %1 : vector<8x32xf32>
    %cst_53 = arith.constant dense<0.000000e+00> : vector<8xf32>
    %97 = vector.multi_reduction <add>, %96, %cst_53 [1] : vector<8x32xf32> to vector<8xf32>
    %98 = vector.shape_cast %97 : vector<8xf32> to vector<8x1xf32>
    %cst_54 = arith.constant dense<0.000000e+00> : vector<1xf32>
    %99 = vector.multi_reduction <add>, %98, %cst_54 [0] : vector<8x1xf32> to vector<1xf32>
    %100 = vector.shape_cast %99 : vector<1xf32> to vector<1x1xf32>
    %101 = arith.mulf %96, %96 : vector<8x32xf32>
    %cst_55 = arith.constant dense<0.000000e+00> : vector<8xf32>
    %102 = vector.multi_reduction <add>, %101, %cst_55 [1] : vector<8x32xf32> to vector<8xf32>
    %103 = vector.shape_cast %102 : vector<8xf32> to vector<8x1xf32>
    %cst_56 = arith.constant dense<0.000000e+00> : vector<1xf32>
    %104 = vector.multi_reduction <add>, %103, %cst_56 [0] : vector<8x1xf32> to vector<1xf32>
    %105 = vector.shape_cast %104 : vector<1xf32> to vector<1x1xf32>
    %cst_57 = arith.constant 3.906250e-03 : f32
    %106 = vector.broadcast %cst_57 : f32 to vector<1x1xf32>
    %107 = arith.mulf %100, %106 : vector<1x1xf32>
    %cst_58 = arith.constant 3.906250e-03 : f32
    %108 = vector.broadcast %cst_58 : f32 to vector<1x1xf32>
    %109 = arith.mulf %105, %108 : vector<1x1xf32>
    %110 = arith.mulf %107, %107 : vector<1x1xf32>
    %111 = arith.subf %109, %110 : vector<1x1xf32>
    %112 = vector.broadcast %107 : vector<1x1xf32> to vector<8x32xf32>
    %113 = arith.subf %96, %112 : vector<8x32xf32>
    %cst_59 = arith.constant 9.99999974E-6 : f32
    %114 = vector.broadcast %cst_59 : f32 to vector<1x1xf32>
    %115 = arith.addf %111, %114 : vector<1x1xf32>
    %116 = math.rsqrt %115 : vector<1x1xf32>
    %117 = vector.broadcast %116 : vector<1x1xf32> to vector<8x32xf32>
    %118 = arith.mulf %113, %117 : vector<8x32xf32>
    %119 = arith.mulf %118, %30 : vector<8x32xf32>
    %120 = arith.addf %119, %31 : vector<8x32xf32>
    %121 = arith.truncf %120 : vector<8x32xf32> to vector<8x32xbf16>
    %cst_60 = arith.constant dense<0.000000e+00> : vector<8x32xf32>
    %122 = tpu.matmul %121, %35, %cst_60 {dimension_numbers = #tpu.dot_dimension_numbers<[1], [0], [0], [1], [0, 0, 1, 1], [], []>} : vector<8x32xbf16>, vector<32x32xbf16>, vector<8x32xf32> -> vector<8x32xf32>
    %123 = arith.truncf %122 : vector<8x32xf32> to vector<8x32xbf16>
    %124 = vector.extract_strided_slice %123 {offsets = [0, 0], sizes = [8, 16], strides = [1, 1]} : vector<8x32xbf16> to vector<8x16xbf16>
    %cst_61 = arith.constant dense<0.000000e+00> : vector<8x8xf32>
    %125 = tpu.matmul %124, %24, %cst_61 {dimension_numbers = #tpu.dot_dimension_numbers<[1], [1], [0], [0], [0, 0, 1, 0], [], []>} : vector<8x16xbf16>, vector<8x16xbf16>, vector<8x8xf32> -> vector<8x8xf32>
    %cst_62 = arith.constant dense<0xFF800000> : vector<8xf32>
    %126 = vector.multi_reduction <maximumf>, %125, %cst_62 [1] : vector<8x8xf32> to vector<8xf32>
    %127 = vector.shape_cast %126 : vector<8xf32> to vector<8x1xf32>
    %128 = vector.broadcast %127 : vector<8x1xf32> to vector<8x8xf32>
    %129 = arith.subf %125, %128 : vector<8x8xf32>
    %130 = math.exp %129 : vector<8x8xf32>
    %cst_63 = arith.constant dense<0.000000e+00> : vector<8xf32>
    %131 = vector.multi_reduction <add>, %130, %cst_63 [1] : vector<8x8xf32> to vector<8xf32>
    %132 = vector.shape_cast %131 : vector<8xf32> to vector<8x1xf32>
    %133 = tpu.reciprocal %132 {approx = true} : vector<8x1xf32> -> vector<8x1xf32>
    %134 = vector.broadcast %133 : vector<8x1xf32> to vector<8x8xf32>
    %135 = arith.mulf %130, %134 : vector<8x8xf32>
    %136 = arith.truncf %135 : vector<8x8xf32> to vector<8x8xbf16>
    %cst_64 = arith.constant dense<0.000000e+00> : vector<8x16xf32>
    %137 = tpu.matmul %136, %26, %cst_64 {dimension_numbers = #tpu.dot_dimension_numbers<[1], [0], [0], [1], [0, 0, 1, 1], [], []>} : vector<8x8xbf16>, vector<8x16xbf16>, vector<8x16xf32> -> vector<8x16xf32>
    %138 = vector.extract_strided_slice %123 {offsets = [0, 16], sizes = [8, 16], strides = [1, 1]} : vector<8x32xbf16> to vector<8x16xbf16>
    %cst_65 = arith.constant dense<0.000000e+00> : vector<8x8xf32>
    %139 = tpu.matmul %138, %25, %cst_65 {dimension_numbers = #tpu.dot_dimension_numbers<[1], [1], [0], [0], [0, 0, 1, 0], [], []>} : vector<8x16xbf16>, vector<8x16xbf16>, vector<8x8xf32> -> vector<8x8xf32>
    %cst_66 = arith.constant dense<0xFF800000> : vector<8xf32>
    %140 = vector.multi_reduction <maximumf>, %139, %cst_66 [1] : vector<8x8xf32> to vector<8xf32>
    %141 = vector.shape_cast %140 : vector<8xf32> to vector<8x1xf32>
    %142 = vector.broadcast %141 : vector<8x1xf32> to vector<8x8xf32>
    %143 = arith.subf %139, %142 : vector<8x8xf32>
    %144 = math.exp %143 : vector<8x8xf32>
    %cst_67 = arith.constant dense<0.000000e+00> : vector<8xf32>
    %145 = vector.multi_reduction <add>, %144, %cst_67 [1] : vector<8x8xf32> to vector<8xf32>
    %146 = vector.shape_cast %145 : vector<8xf32> to vector<8x1xf32>
    %147 = tpu.reciprocal %146 {approx = true} : vector<8x1xf32> -> vector<8x1xf32>
    %148 = vector.broadcast %147 : vector<8x1xf32> to vector<8x8xf32>
    %149 = arith.mulf %144, %148 : vector<8x8xf32>
    %150 = arith.truncf %149 : vector<8x8xf32> to vector<8x8xbf16>
    %cst_68 = arith.constant dense<0.000000e+00> : vector<8x16xf32>
    %151 = tpu.matmul %150, %27, %cst_68 {dimension_numbers = #tpu.dot_dimension_numbers<[1], [0], [0], [1], [0, 0, 1, 1], [], []>} : vector<8x8xbf16>, vector<8x16xbf16>, vector<8x16xf32> -> vector<8x16xf32>
    %152 = tpu.concatenate %137, %151 in 1 : vector<8x16xf32>, vector<8x16xf32> -> vector<8x32xf32>
    %153 = arith.addf %152, %96 : vector<8x32xf32>
    %cst_69 = arith.constant dense<0.000000e+00> : vector<8xf32>
    %154 = vector.multi_reduction <add>, %153, %cst_69 [1] : vector<8x32xf32> to vector<8xf32>
    %155 = vector.shape_cast %154 : vector<8xf32> to vector<8x1xf32>
    %cst_70 = arith.constant dense<0.000000e+00> : vector<1xf32>
    %156 = vector.multi_reduction <add>, %155, %cst_70 [0] : vector<8x1xf32> to vector<1xf32>
    %157 = vector.shape_cast %156 : vector<1xf32> to vector<1x1xf32>
    %158 = arith.mulf %153, %153 : vector<8x32xf32>
    %cst_71 = arith.constant dense<0.000000e+00> : vector<8xf32>
    %159 = vector.multi_reduction <add>, %158, %cst_71 [1] : vector<8x32xf32> to vector<8xf32>
    %160 = vector.shape_cast %159 : vector<8xf32> to vector<8x1xf32>
    %cst_72 = arith.constant dense<0.000000e+00> : vector<1xf32>
    %161 = vector.multi_reduction <add>, %160, %cst_72 [0] : vector<8x1xf32> to vector<1xf32>
    %162 = vector.shape_cast %161 : vector<1xf32> to vector<1x1xf32>
    %cst_73 = arith.constant 3.906250e-03 : f32
    %163 = vector.broadcast %cst_73 : f32 to vector<1x1xf32>
    %164 = arith.mulf %157, %163 : vector<1x1xf32>
    %cst_74 = arith.constant 3.906250e-03 : f32
    %165 = vector.broadcast %cst_74 : f32 to vector<1x1xf32>
    %166 = arith.mulf %162, %165 : vector<1x1xf32>
    %167 = arith.mulf %164, %164 : vector<1x1xf32>
    %168 = arith.subf %166, %167 : vector<1x1xf32>
    %169 = vector.broadcast %164 : vector<1x1xf32> to vector<8x32xf32>
    %170 = arith.subf %153, %169 : vector<8x32xf32>
    %cst_75 = arith.constant 9.99999974E-6 : f32
    %171 = vector.broadcast %cst_75 : f32 to vector<1x1xf32>
    %172 = arith.addf %168, %171 : vector<1x1xf32>
    %173 = math.rsqrt %172 : vector<1x1xf32>
    %174 = vector.broadcast %173 : vector<1x1xf32> to vector<8x32xf32>
    %175 = arith.mulf %170, %174 : vector<8x32xf32>
    %176 = arith.mulf %175, %32 : vector<8x32xf32>
    %177 = arith.addf %176, %33 : vector<8x32xf32>
    %178 = arith.truncf %177 : vector<8x32xf32> to vector<8x32xbf16>
    %cst_76 = arith.constant dense<0.000000e+00> : vector<8x64xf32>
    %179 = tpu.matmul %178, %36, %cst_76 {dimension_numbers = #tpu.dot_dimension_numbers<[1], [0], [0], [1], [0, 0, 1, 1], [], []>} : vector<8x32xbf16>, vector<32x64xbf16>, vector<8x64xf32> -> vector<8x64xf32>
    %180 = vector.broadcast %38 : vector<1x64xf32> to vector<8x64xf32>
    %181 = arith.addf %179, %180 : vector<8x64xf32>
    %cst_77 = arith.constant 0.000000e+00 : f32
    %182 = vector.broadcast %cst_77 : f32 to vector<8x64xf32>
    %183 = arith.maximumf %181, %182 : vector<8x64xf32>
    %184 = arith.truncf %183 : vector<8x64xf32> to vector<8x64xbf16>
    %cst_78 = arith.constant dense<0.000000e+00> : vector<8x32xf32>
    %185 = tpu.matmul %184, %37, %cst_78 {dimension_numbers = #tpu.dot_dimension_numbers<[1], [0], [0], [1], [0, 0, 1, 1], [], []>} : vector<8x64xbf16>, vector<64x32xbf16>, vector<8x32xf32> -> vector<8x32xf32>
    %186 = vector.broadcast %39 : vector<1x32xf32> to vector<8x32xf32>
    %187 = arith.addf %185, %186 : vector<8x32xf32>
    %188 = arith.addf %187, %153 : vector<8x32xf32>
    %c0_79 = arith.constant 0 : index
    %c0_80 = arith.constant 0 : index
    %c0_81 = arith.constant 0 : index
    %c0_82 = arith.constant 0 : index
    %189 = vector.load %arg18[%c0_79, %c0_80, %c0_81, %c0_82] : memref<2x1x8x32xf32, #tpu.memory_space<vmem>>, vector<1x1x8x32xf32>
    %190 = vector.shape_cast %189 : vector<1x1x8x32xf32> to vector<8x32xf32>
    %191 = vector.shape_cast %188 : vector<8x32xf32> to vector<1x1x8x32xf32>
    tpu.vector_store %arg18[%c0_79, %c0_80, %c0_81, %c0_82], %191 {strides = array<i32>} : memref<2x1x8x32xf32, #tpu.memory_space<vmem>>, vector<1x1x8x32xf32>,
    %cst_83 = arith.constant dense<0.000000e+00> : vector<8xf32>
    %192 = vector.multi_reduction <add>, %188, %cst_83 [1] : vector<8x32xf32> to vector<8xf32>
    %193 = vector.shape_cast %192 : vector<8xf32> to vector<8x1xf32>
    %cst_84 = arith.constant dense<0.000000e+00> : vector<1xf32>
    %194 = vector.multi_reduction <add>, %193, %cst_84 [0] : vector<8x1xf32> to vector<1xf32>
    %195 = vector.shape_cast %194 : vector<1xf32> to vector<1x1xf32>
    %196 = arith.mulf %188, %188 : vector<8x32xf32>
    %cst_85 = arith.constant dense<0.000000e+00> : vector<8xf32>
    %197 = vector.multi_reduction <add>, %196, %cst_85 [1] : vector<8x32xf32> to vector<8xf32>
    %198 = vector.shape_cast %197 : vector<8xf32> to vector<8x1xf32>
    %cst_86 = arith.constant dense<0.000000e+00> : vector<1xf32>
    %199 = vector.multi_reduction <add>, %198, %cst_86 [0] : vector<8x1xf32> to vector<1xf32>
    %200 = vector.shape_cast %199 : vector<1xf32> to vector<1x1xf32>
    %cst_87 = arith.constant 3.906250e-03 : f32
    %201 = vector.broadcast %cst_87 : f32 to vector<1x1xf32>
    %202 = arith.mulf %195, %201 : vector<1x1xf32>
    %cst_88 = arith.constant 3.906250e-03 : f32
    %203 = vector.broadcast %cst_88 : f32 to vector<1x1xf32>
    %204 = arith.mulf %200, %203 : vector<1x1xf32>
    %205 = arith.mulf %202, %202 : vector<1x1xf32>
    %206 = arith.subf %204, %205 : vector<1x1xf32>
    %207 = vector.broadcast %202 : vector<1x1xf32> to vector<8x32xf32>
    %208 = arith.subf %188, %207 : vector<8x32xf32>
    %cst_89 = arith.constant 9.99999974E-6 : f32
    %209 = vector.broadcast %cst_89 : f32 to vector<1x1xf32>
    %210 = arith.addf %206, %209 : vector<1x1xf32>
    %211 = math.rsqrt %210 : vector<1x1xf32>
    %212 = vector.broadcast %211 : vector<1x1xf32> to vector<8x32xf32>
    %213 = arith.mulf %208, %212 : vector<8x32xf32>
    %214 = arith.mulf %213, %28 : vector<8x32xf32>
    %215 = arith.addf %214, %29 : vector<8x32xf32>
    %216 = arith.truncf %215 : vector<8x32xf32> to vector<8x32xbf16>
    %cst_90 = arith.constant dense<0.000000e+00> : vector<8x32xf32>
    %217 = tpu.matmul %216, %34, %cst_90 {dimension_numbers = #tpu.dot_dimension_numbers<[1], [0], [0], [1], [0, 0, 1, 1], [], []>} : vector<8x32xbf16>, vector<32x32xbf16>, vector<8x32xf32> -> vector<8x32xf32>
    %218 = arith.truncf %217 : vector<8x32xf32> to vector<8x32xbf16>
    %219 = vector.extract_strided_slice %218 {offsets = [0, 0], sizes = [8, 16], strides = [1, 1]} : vector<8x32xbf16> to vector<8x16xbf16>
    %cst_91 = arith.constant dense<0.000000e+00> : vector<8x8xf32>
    %220 = tpu.matmul %219, %13, %cst_91 {dimension_numbers = #tpu.dot_dimension_numbers<[1], [1], [0], [0], [0, 0, 1, 0], [], []>} : vector<8x16xbf16>, vector<8x16xbf16>, vector<8x8xf32> -> vector<8x8xf32>
    %cst_92 = arith.constant dense<0xFF800000> : vector<8xf32>
    %221 = vector.multi_reduction <maximumf>, %220, %cst_92 [1] : vector<8x8xf32> to vector<8xf32>
    %222 = vector.shape_cast %221 : vector<8xf32> to vector<8x1xf32>
    %223 = vector.broadcast %222 : vector<8x1xf32> to vector<8x8xf32>
    %224 = arith.subf %220, %223 : vector<8x8xf32>
    %225 = math.exp %224 : vector<8x8xf32>
    %cst_93 = arith.constant dense<0.000000e+00> : vector<8xf32>
    %226 = vector.multi_reduction <add>, %225, %cst_93 [1] : vector<8x8xf32> to vector<8xf32>
    %227 = vector.shape_cast %226 : vector<8xf32> to vector<8x1xf32>
    %228 = tpu.reciprocal %227 {approx = true} : vector<8x1xf32> -> vector<8x1xf32>
    %229 = vector.broadcast %228 : vector<8x1xf32> to vector<8x8xf32>
    %230 = arith.mulf %225, %229 : vector<8x8xf32>
    %231 = arith.truncf %230 : vector<8x8xf32> to vector<8x8xbf16>
    %cst_94 = arith.constant dense<0.000000e+00> : vector<8x16xf32>
    %232 = tpu.matmul %231, %15, %cst_94 {dimension_numbers = #tpu.dot_dimension_numbers<[1], [0], [0], [1], [0, 0, 1, 1], [], []>} : vector<8x8xbf16>, vector<8x16xbf16>, vector<8x16xf32> -> vector<8x16xf32>
    %233 = vector.extract_strided_slice %218 {offsets = [0, 16], sizes = [8, 16], strides = [1, 1]} : vector<8x32xbf16> to vector<8x16xbf16>
    %cst_95 = arith.constant dense<0.000000e+00> : vector<8x8xf32>
    %234 = tpu.matmul %233, %14, %cst_95 {dimension_numbers = #tpu.dot_dimension_numbers<[1], [1], [0], [0], [0, 0, 1, 0], [], []>} : vector<8x16xbf16>, vector<8x16xbf16>, vector<8x8xf32> -> vector<8x8xf32>
    %cst_96 = arith.constant dense<0xFF800000> : vector<8xf32>
    %235 = vector.multi_reduction <maximumf>, %234, %cst_96 [1] : vector<8x8xf32> to vector<8xf32>
    %236 = vector.shape_cast %235 : vector<8xf32> to vector<8x1xf32>
    %237 = vector.broadcast %236 : vector<8x1xf32> to vector<8x8xf32>
    %238 = arith.subf %234, %237 : vector<8x8xf32>
    %239 = math.exp %238 : vector<8x8xf32>
    %cst_97 = arith.constant dense<0.000000e+00> : vector<8xf32>
    %240 = vector.multi_reduction <add>, %239, %cst_97 [1] : vector<8x8xf32> to vector<8xf32>
    %241 = vector.shape_cast %240 : vector<8xf32> to vector<8x1xf32>
    %242 = tpu.reciprocal %241 {approx = true} : vector<8x1xf32> -> vector<8x1xf32>
    %243 = vector.broadcast %242 : vector<8x1xf32> to vector<8x8xf32>
    %244 = arith.mulf %239, %243 : vector<8x8xf32>
    %245 = arith.truncf %244 : vector<8x8xf32> to vector<8x8xbf16>
    %cst_98 = arith.constant dense<0.000000e+00> : vector<8x16xf32>
    %246 = tpu.matmul %245, %16, %cst_98 {dimension_numbers = #tpu.dot_dimension_numbers<[1], [0], [0], [1], [0, 0, 1, 1], [], []>} : vector<8x8xbf16>, vector<8x16xbf16>, vector<8x16xf32> -> vector<8x16xf32>
    %247 = tpu.concatenate %232, %246 in 1 : vector<8x16xf32>, vector<8x16xf32> -> vector<8x32xf32>
    %248 = arith.addf %247, %188 : vector<8x32xf32>
    %cst_99 = arith.constant dense<0.000000e+00> : vector<8xf32>
    %249 = vector.multi_reduction <add>, %248, %cst_99 [1] : vector<8x32xf32> to vector<8xf32>
    %250 = vector.shape_cast %249 : vector<8xf32> to vector<8x1xf32>
    %cst_100 = arith.constant dense<0.000000e+00> : vector<1xf32>
    %251 = vector.multi_reduction <add>, %250, %cst_100 [0] : vector<8x1xf32> to vector<1xf32>
    %252 = vector.shape_cast %251 : vector<1xf32> to vector<1x1xf32>
    %253 = arith.mulf %248, %248 : vector<8x32xf32>
    %cst_101 = arith.constant dense<0.000000e+00> : vector<8xf32>
    %254 = vector.multi_reduction <add>, %253, %cst_101 [1] : vector<8x32xf32> to vector<8xf32>
    %255 = vector.shape_cast %254 : vector<8xf32> to vector<8x1xf32>
    %cst_102 = arith.constant dense<0.000000e+00> : vector<1xf32>
    %256 = vector.multi_reduction <add>, %255, %cst_102 [0] : vector<8x1xf32> to vector<1xf32>
    %257 = vector.shape_cast %256 : vector<1xf32> to vector<1x1xf32>
    %cst_103 = arith.constant 3.906250e-03 : f32
    %258 = vector.broadcast %cst_103 : f32 to vector<1x1xf32>
    %259 = arith.mulf %252, %258 : vector<1x1xf32>
    %cst_104 = arith.constant 3.906250e-03 : f32
    %260 = vector.broadcast %cst_104 : f32 to vector<1x1xf32>
    %261 = arith.mulf %257, %260 : vector<1x1xf32>
    %262 = arith.mulf %259, %259 : vector<1x1xf32>
    %263 = arith.subf %261, %262 : vector<1x1xf32>
    %264 = vector.broadcast %259 : vector<1x1xf32> to vector<8x32xf32>
    %265 = arith.subf %248, %264 : vector<8x32xf32>
    %cst_105 = arith.constant 9.99999974E-6 : f32
    %266 = vector.broadcast %cst_105 : f32 to vector<1x1xf32>
    %267 = arith.addf %263, %266 : vector<1x1xf32>
    %268 = math.rsqrt %267 : vector<1x1xf32>
    %269 = vector.broadcast %268 : vector<1x1xf32> to vector<8x32xf32>
    %270 = arith.mulf %265, %269 : vector<8x32xf32>
    %271 = arith.mulf %270, %30 : vector<8x32xf32>
    %272 = arith.addf %271, %31 : vector<8x32xf32>
    %273 = arith.truncf %272 : vector<8x32xf32> to vector<8x32xbf16>
    %cst_106 = arith.constant dense<0.000000e+00> : vector<8x32xf32>
    %274 = tpu.matmul %273, %35, %cst_106 {dimension_numbers = #tpu.dot_dimension_numbers<[1], [0], [0], [1], [0, 0, 1, 1], [], []>} : vector<8x32xbf16>, vector<32x32xbf16>, vector<8x32xf32> -> vector<8x32xf32>
    %275 = arith.truncf %274 : vector<8x32xf32> to vector<8x32xbf16>
    %276 = vector.extract_strided_slice %275 {offsets = [0, 0], sizes = [8, 16], strides = [1, 1]} : vector<8x32xbf16> to vector<8x16xbf16>
    %cst_107 = arith.constant dense<0.000000e+00> : vector<8x8xf32>
    %277 = tpu.matmul %276, %24, %cst_107 {dimension_numbers = #tpu.dot_dimension_numbers<[1], [1], [0], [0], [0, 0, 1, 0], [], []>} : vector<8x16xbf16>, vector<8x16xbf16>, vector<8x8xf32> -> vector<8x8xf32>
    %cst_108 = arith.constant dense<0xFF800000> : vector<8xf32>
    %278 = vector.multi_reduction <maximumf>, %277, %cst_108 [1] : vector<8x8xf32> to vector<8xf32>
    %279 = vector.shape_cast %278 : vector<8xf32> to vector<8x1xf32>
    %280 = vector.broadcast %279 : vector<8x1xf32> to vector<8x8xf32>
    %281 = arith.subf %277, %280 : vector<8x8xf32>
    %282 = math.exp %281 : vector<8x8xf32>
    %cst_109 = arith.constant dense<0.000000e+00> : vector<8xf32>
    %283 = vector.multi_reduction <add>, %282, %cst_109 [1] : vector<8x8xf32> to vector<8xf32>
    %284 = vector.shape_cast %283 : vector<8xf32> to vector<8x1xf32>
    %285 = tpu.reciprocal %284 {approx = true} : vector<8x1xf32> -> vector<8x1xf32>
    %286 = vector.broadcast %285 : vector<8x1xf32> to vector<8x8xf32>
    %287 = arith.mulf %282, %286 : vector<8x8xf32>
    %288 = arith.truncf %287 : vector<8x8xf32> to vector<8x8xbf16>
    %cst_110 = arith.constant dense<0.000000e+00> : vector<8x16xf32>
    %289 = tpu.matmul %288, %26, %cst_110 {dimension_numbers = #tpu.dot_dimension_numbers<[1], [0], [0], [1], [0, 0, 1, 1], [], []>} : vector<8x8xbf16>, vector<8x16xbf16>, vector<8x16xf32> -> vector<8x16xf32>
    %290 = vector.extract_strided_slice %275 {offsets = [0, 16], sizes = [8, 16], strides = [1, 1]} : vector<8x32xbf16> to vector<8x16xbf16>
    %cst_111 = arith.constant dense<0.000000e+00> : vector<8x8xf32>
    %291 = tpu.matmul %290, %25, %cst_111 {dimension_numbers = #tpu.dot_dimension_numbers<[1], [1], [0], [0], [0, 0, 1, 0], [], []>} : vector<8x16xbf16>, vector<8x16xbf16>, vector<8x8xf32> -> vector<8x8xf32>
    %cst_112 = arith.constant dense<0xFF800000> : vector<8xf32>
    %292 = vector.multi_reduction <maximumf>, %291, %cst_112 [1] : vector<8x8xf32> to vector<8xf32>
    %293 = vector.shape_cast %292 : vector<8xf32> to vector<8x1xf32>
    %294 = vector.broadcast %293 : vector<8x1xf32> to vector<8x8xf32>
    %295 = arith.subf %291, %294 : vector<8x8xf32>
    %296 = math.exp %295 : vector<8x8xf32>
    %cst_113 = arith.constant dense<0.000000e+00> : vector<8xf32>
    %297 = vector.multi_reduction <add>, %296, %cst_113 [1] : vector<8x8xf32> to vector<8xf32>
    %298 = vector.shape_cast %297 : vector<8xf32> to vector<8x1xf32>
    %299 = tpu.reciprocal %298 {approx = true} : vector<8x1xf32> -> vector<8x1xf32>
    %300 = vector.broadcast %299 : vector<8x1xf32> to vector<8x8xf32>
    %301 = arith.mulf %296, %300 : vector<8x8xf32>
    %302 = arith.truncf %301 : vector<8x8xf32> to vector<8x8xbf16>
    %cst_114 = arith.constant dense<0.000000e+00> : vector<8x16xf32>
    %303 = tpu.matmul %302, %27, %cst_114 {dimension_numbers = #tpu.dot_dimension_numbers<[1], [0], [0], [1], [0, 0, 1, 1], [], []>} : vector<8x8xbf16>, vector<8x16xbf16>, vector<8x16xf32> -> vector<8x16xf32>
    %304 = tpu.concatenate %289, %303 in 1 : vector<8x16xf32>, vector<8x16xf32> -> vector<8x32xf32>
    %305 = arith.addf %304, %248 : vector<8x32xf32>
    %cst_115 = arith.constant dense<0.000000e+00> : vector<8xf32>
    %306 = vector.multi_reduction <add>, %305, %cst_115 [1] : vector<8x32xf32> to vector<8xf32>
    %307 = vector.shape_cast %306 : vector<8xf32> to vector<8x1xf32>
    %cst_116 = arith.constant dense<0.000000e+00> : vector<1xf32>
    %308 = vector.multi_reduction <add>, %307, %cst_116 [0] : vector<8x1xf32> to vector<1xf32>
    %309 = vector.shape_cast %308 : vector<1xf32> to vector<1x1xf32>
    %310 = arith.mulf %305, %305 : vector<8x32xf32>
    %cst_117 = arith.constant dense<0.000000e+00> : vector<8xf32>
    %311 = vector.multi_reduction <add>, %310, %cst_117 [1] : vector<8x32xf32> to vector<8xf32>
    %312 = vector.shape_cast %311 : vector<8xf32> to vector<8x1xf32>
    %cst_118 = arith.constant dense<0.000000e+00> : vector<1xf32>
    %313 = vector.multi_reduction <add>, %312, %cst_118 [0] : vector<8x1xf32> to vector<1xf32>
    %314 = vector.shape_cast %313 : vector<1xf32> to vector<1x1xf32>
    %cst_119 = arith.constant 3.906250e-03 : f32
    %315 = vector.broadcast %cst_119 : f32 to vector<1x1xf32>
    %316 = arith.mulf %309, %315 : vector<1x1xf32>
    %cst_120 = arith.constant 3.906250e-03 : f32
    %317 = vector.broadcast %cst_120 : f32 to vector<1x1xf32>
    %318 = arith.mulf %314, %317 : vector<1x1xf32>
    %319 = arith.mulf %316, %316 : vector<1x1xf32>
    %320 = arith.subf %318, %319 : vector<1x1xf32>
    %321 = vector.broadcast %316 : vector<1x1xf32> to vector<8x32xf32>
    %322 = arith.subf %305, %321 : vector<8x32xf32>
    %cst_121 = arith.constant 9.99999974E-6 : f32
    %323 = vector.broadcast %cst_121 : f32 to vector<1x1xf32>
    %324 = arith.addf %320, %323 : vector<1x1xf32>
    %325 = math.rsqrt %324 : vector<1x1xf32>
    %326 = vector.broadcast %325 : vector<1x1xf32> to vector<8x32xf32>
    %327 = arith.mulf %322, %326 : vector<8x32xf32>
    %328 = arith.mulf %327, %32 : vector<8x32xf32>
    %329 = arith.addf %328, %33 : vector<8x32xf32>
    %330 = arith.truncf %329 : vector<8x32xf32> to vector<8x32xbf16>
    %cst_122 = arith.constant dense<0.000000e+00> : vector<8x64xf32>
    %331 = tpu.matmul %330, %36, %cst_122 {dimension_numbers = #tpu.dot_dimension_numbers<[1], [0], [0], [1], [0, 0, 1, 1], [], []>} : vector<8x32xbf16>, vector<32x64xbf16>, vector<8x64xf32> -> vector<8x64xf32>
    %332 = vector.broadcast %38 : vector<1x64xf32> to vector<8x64xf32>
    %333 = arith.addf %331, %332 : vector<8x64xf32>
    %cst_123 = arith.constant 0.000000e+00 : f32
    %334 = vector.broadcast %cst_123 : f32 to vector<8x64xf32>
    %335 = arith.maximumf %333, %334 : vector<8x64xf32>
    %336 = arith.truncf %335 : vector<8x64xf32> to vector<8x64xbf16>
    %cst_124 = arith.constant dense<0.000000e+00> : vector<8x32xf32>
    %337 = tpu.matmul %336, %37, %cst_124 {dimension_numbers = #tpu.dot_dimension_numbers<[1], [0], [0], [1], [0, 0, 1, 1], [], []>} : vector<8x64xbf16>, vector<64x32xbf16>, vector<8x32xf32> -> vector<8x32xf32>
    %338 = vector.broadcast %39 : vector<1x32xf32> to vector<8x32xf32>
    %339 = arith.addf %337, %338 : vector<8x32xf32>
    %340 = arith.addf %339, %305 : vector<8x32xf32>
    %c1 = arith.constant 1 : index
    %c0_125 = arith.constant 0 : index
    %c0_126 = arith.constant 0 : index
    %c0_127 = arith.constant 0 : index
    %341 = vector.load %arg18[%c1, %c0_125, %c0_126, %c0_127] : memref<2x1x8x32xf32, #tpu.memory_space<vmem>>, vector<1x1x8x32xf32>
    %342 = vector.shape_cast %341 : vector<1x1x8x32xf32> to vector<8x32xf32>
    %343 = vector.shape_cast %340 : vector<8x32xf32> to vector<1x1x8x32xf32>
    tpu.vector_store %arg18[%c1, %c0_125, %c0_126, %c0_127], %343 {strides = array<i32>} : memref<2x1x8x32xf32, #tpu.memory_space<vmem>>, vector<1x1x8x32xf32>,
    return
  }
  func.func @transform_0(%arg0: i32) -> (i32, i32, i32) {
    %c0_i32 = arith.constant 0 : i32
    %c0_i32_0 = arith.constant 0 : i32
    %c0_i32_1 = arith.constant 0 : i32
    return %arg0, %c0_i32, %c0_i32_0 : i32, i32, i32
  }
  func.func @transform_1(%arg0: i32) -> (i32, i32, i32) {
    %c0_i32 = arith.constant 0 : i32
    %c0_i32_0 = arith.constant 0 : i32
    %c0_i32_1 = arith.constant 0 : i32
    return %arg0, %c0_i32, %c0_i32_0 : i32, i32, i32
  }
  func.func @transform_2(%arg0: i32) -> (i32, i32, i32) {
    %c0_i32 = arith.constant 0 : i32
    %c0_i32_0 = arith.constant 0 : i32
    %c0_i32_1 = arith.constant 0 : i32
    return %arg0, %c0_i32, %c0_i32_0 : i32, i32, i32
  }
  func.func @transform_3(%arg0: i32) -> (i32, i32) {
    %c0_i32 = arith.constant 0 : i32
    %c0_i32_0 = arith.constant 0 : i32
    %c0_i32_1 = arith.constant 0 : i32
    return %c0_i32, %c0_i32_0 : i32, i32
  }
  func.func @transform_4(%arg0: i32) -> (i32, i32) {
    %c0_i32 = arith.constant 0 : i32
    %c0_i32_0 = arith.constant 0 : i32
    %c0_i32_1 = arith.constant 0 : i32
    return %c0_i32, %c0_i32_0 : i32, i32
  }
  func.func @transform_5(%arg0: i32) -> (i32, i32) {
    %c0_i32 = arith.constant 0 : i32
    %c0_i32_0 = arith.constant 0 : i32
    %c0_i32_1 = arith.constant 0 : i32
    return %c0_i32, %c0_i32_0 : i32, i32
  }
  func.func @transform_6(%arg0: i32) -> (i32, i32) {
    %c0_i32 = arith.constant 0 : i32
    %c0_i32_0 = arith.constant 0 : i32
    %c0_i32_1 = arith.constant 0 : i32
    return %c0_i32, %c0_i32_0 : i32, i32
  }
  func.func @transform_7(%arg0: i32) -> (i32, i32) {
    %c0_i32 = arith.constant 0 : i32
    %c0_i32_0 = arith.constant 0 : i32
    %c0_i32_1 = arith.constant 0 : i32
    return %c0_i32, %c0_i32_0 : i32, i32
  }
  func.func @transform_8(%arg0: i32) -> (i32, i32) {
    %c0_i32 = arith.constant 0 : i32
    %c0_i32_0 = arith.constant 0 : i32
    %c0_i32_1 = arith.constant 0 : i32
    return %c0_i32, %c0_i32_0 : i32, i32
  }
  func.func @transform_9(%arg0: i32) -> (i32, i32) {
    %c0_i32 = arith.constant 0 : i32
    %c0_i32_0 = arith.constant 0 : i32
    %c0_i32_1 = arith.constant 0 : i32
    return %c0_i32, %c0_i32_0 : i32, i32
  }
  func.func @transform_10(%arg0: i32) -> (i32, i32) {
    %c0_i32 = arith.constant 0 : i32
    %c0_i32_0 = arith.constant 0 : i32
    %c0_i32_1 = arith.constant 0 : i32
    return %c0_i32, %c0_i32_0 : i32, i32
  }
  func.func @transform_11(%arg0: i32) -> (i32, i32) {
    %c0_i32 = arith.constant 0 : i32
    %c0_i32_0 = arith.constant 0 : i32
    %c0_i32_1 = arith.constant 0 : i32
    return %c0_i32, %c0_i32_0 : i32, i32
  }
  func.func @transform_12(%arg0: i32) -> (i32, i32) {
    %c0_i32 = arith.constant 0 : i32
    %c0_i32_0 = arith.constant 0 : i32
    %c0_i32_1 = arith.constant 0 : i32
    return %c0_i32, %c0_i32_0 : i32, i32
  }
  func.func @transform_13(%arg0: i32) -> (i32, i32) {
    %c0_i32 = arith.constant 0 : i32
    %c0_i32_0 = arith.constant 0 : i32
    %c0_i32_1 = arith.constant 0 : i32
    return %c0_i32, %c0_i32_0 : i32, i32
  }
  func.func @transform_14(%arg0: i32) -> (i32, i32) {
    %c0_i32 = arith.constant 0 : i32
    %c0_i32_0 = arith.constant 0 : i32
    %c0_i32_1 = arith.constant 0 : i32
    return %c0_i32, %c0_i32_0 : i32, i32
  }
  func.func @transform_15(%arg0: i32) -> (i32, i32) {
    %c0_i32 = arith.constant 0 : i32
    %c0_i32_0 = arith.constant 0 : i32
    %c0_i32_1 = arith.constant 0 : i32
    return %c0_i32, %c0_i32_0 : i32, i32
  }
  func.func @transform_16(%arg0: i32) -> (i32, i32) {
    %c0_i32 = arith.constant 0 : i32
    %c0_i32_0 = arith.constant 0 : i32
    %c0_i32_1 = arith.constant 0 : i32
    return %c0_i32, %c0_i32_0 : i32, i32
  }
  func.func @transform_17(%arg0: i32) -> (i32, i32, i32, i32) {
    %c0_i32 = arith.constant 0 : i32
    %c0_i32_0 = arith.constant 0 : i32
    %c0_i32_1 = arith.constant 0 : i32
    %c0_i32_2 = arith.constant 0 : i32
    return %c0_i32, %arg0, %c0_i32_0, %c0_i32_1 : i32, i32, i32, i32
  }
}

</mosaic_0001>

<bundles_post_ra>
// kernel: tpu_custom_call.1
= control target key start
LH: loop header
LB: loop body
LE: loop exit
PB: predicated region body
PF: predicated region fallthrough
CT: control target
= control target key end

     0   :  { %s4187_s0 = inlined_call_operand.vmem [shape: f32[2,8,32], index: 0, kind: input, shape index: {}]   ;;  %s4188_s1 = inlined_call_operand.vmem [shape: f32[2,8,32], index: 1, kind: input, shape index: {}]   ;;  %s4189_s2 = inlined_call_operand.vmem [shape: f32[2,8,32], index: 2, kind: input, shape index: {}]   ;;  %s4190_s3 = inlined_call_operand.hbm [shape: bf16[32,32], index: 3, kind: input, shape index: {}]   ;;  %s4191_s4 = inlined_call_operand.hbm [shape: bf16[32,64], index: 4, kind: input, shape index: {}]   ;;  %s4192_s5 = inlined_call_operand.hbm [shape: bf16[32,32], index: 5, kind: input, shape index: {}]   ;;  %s4193_s6 = inlined_call_operand.hbm [shape: bf16[32,64], index: 6, kind: input, shape index: {}]   ;;  %s4194_s7 = inlined_call_operand.hbm [shape: f32[8,32], index: 7, kind: input, shape index: {}]   ;;  %s4195_s8 = inlined_call_operand.hbm [shape: f32[8,32], index: 8, kind: input, shape index: {}]   ;;  %s4196_s9 = inlined_call_operand.hbm [shape: f32[8,32], index: 9, kind: input, shape index: {}]   ;;  %s4197_s10 = inlined_call_operand.hbm [shape: f32[8,32], index: 10, kind: input, shape index: {}]   ;;  %s4198_s11 = inlined_call_operand.vmem [shape: f32[8,32], index: 11, kind: input, shape index: {}]   ;;  %s4199_s12 = inlined_call_operand.hbm [shape: f32[8,32], index: 12, kind: input, shape index: {}]   ;;  %s4200_s13 = inlined_call_operand.vmem [shape: bf16[32,64], index: 13, kind: input, shape index: {}]   ;;  %s4201_s14 = inlined_call_operand.vmem [shape: f32[1,64], index: 14, kind: input, shape index: {}]   ;;  %s4202_s15 = inlined_call_operand.vmem [shape: bf16[64,32], index: 15, kind: input, shape index: {}]   ;;  %s4203_s16 = inlined_call_operand.vmem [shape: f32[1,32], index: 16, kind: input, shape index: {}]   ;;  %s4204_s17 = inlined_call_operand.hbm [shape: f32[2,2,8,32], index: 17, kind: output, shape index: {}]  }
   0x1   :  { %4221 = sst [smem:[#allocation32_spill]] %s4187_s0 }
   0x2   :  { %4222 = sst [smem:[#allocation33_spill]] %s4188_s1 }
   0x3   :  { %4223 = sst [smem:[#allocation34_spill]] %s4191_s4 }
   0x4   :  { %4224 = sst [smem:[#allocation35_spill]] %s4201_s14 }
   0x5   :  { %4225 = sst [smem:[#allocation36_spill]] %s4203_s16 }
   0x6   :  { %4226 = sst [smem:[#allocation37_spill]] %s4204_s17 }
   0x7   :  { %22 = vsyncpa [#allocation3], 0 }
   0x8   :  { %23 = vsyncpa [#allocation6], 0 }
   0x9   :  { %24 = vsyncpa [#allocation9], 0 }
   0xa   :  { %25 = vsyncpa [#allocation12], 0 }
   0xb   :  { %26 = vsyncpa [#allocation15], 0 }
   0xc   :  { %27 = vsyncpa [#allocation4], 0 }
   0xd   :  { %29 = vsyncpa [#allocation4 + $0x1], 0  ;;  %s3481_s24 = smov 0   ;;  %s3483_s25 = smov 0  }
   0xe   :  { %s3485_s26 = smov 0   ;;  %s3487_s27 = smov 0  }
   0xf LB: > { %4227 = sst [smem:[#allocation24_spill]] %s3356_s24  ;;  %s3502_s28 = sadd.s32 4294967295, %s3368_s27   ;;  %s3368_s27 = sphi %s3487_s27, %s4265_s27   ;;  %s3364_s26 = sphi %s3485_s26, %s4268_s26   ;;  %s3360_s25 = sphi %s3483_s25, %s4267_s25   ;;  %s3356_s24 = sphi %s3481_s24, %s4266_s24  }
  0x10   : > { %4228 = sst [smem:[#allocation25_spill]] %s3360_s25  ;;  %s2512_s29 = sadd.s32 4294967294, %s3368_s27  }
  0x11   : > { %4229 = sst [smem:[#allocation26_spill]] %s3364_s26  ;;  %s3506_s0 = sadd.s32 1, %s3368_s27  }
  0x12   : > { %4230 = sst [smem:[#allocation27_spill]] %s3368_s27  ;;  %s414_s30 = sadd.s32 1, %s3364_s26 }
  0x13   : > { %4231 = sst [smem:[#allocation28_spill]] %s3506_s0  ;;  %s411_s18 = ssub.s32 %s3368_s27, %s3506_s0 }
  0x14   : > { %p424_p0 = scmp.ne.s32.totalorder %s3364_s26, %s3360_s25  ;;  %p412_p1 = scmp.eq.s32.totalorder %s411_s18, 0 }
  0x15   : > { %p425_p2 = scmp.eq.s32.totalorder %s3502_s28, 1  ;;  %p430_p3 = scmp.ne.s32.totalorder %s3360_s25, %s3356_s24 }
  0x16   : > { %p431_p4 = scmp.eq.s32.totalorder %s2512_s29, 1  ;;  %p2513_p7 = scmp.ge.s32.totalorder %s3368_s27, 1 }
  0x17   : > { %s3517_s19 = scalar_select %p412_p1, %s3364_s26, %s414_s30  }
  0x18   : > { %p3519_p5 = por %p425_p2, %p424_p0  ;;  %p3523_p6 = por %p431_p4, %p430_p3 }
  0x19   : > { %4232 = sst [smem:[#allocation29_spill]] %s3517_s19  ;;  %p438_p8 = scmp.lt.s32.totalorder %s3368_s27, 3 }
  0x1a   : > { %s4233_s1 = scalar_select %p3519_p5, 1, 0 }
  0x1b   : > { %s4235_s20 = scalar_select %p3523_p6, 1, 0 }
  0x1c   : > { %4234 = sst [smem:[#allocation30_spill]] %s4233_s1  ;;  %p4212_p9 = scmp.eq.s32.totalorder %s3502_s28, 0 }
  0x1d   : > { %4236 = sst [smem:[#allocation31_spill]] %s4235_s20  ;;  %p3530_p10 = pnand %p2513_p7, %p438_p8 }
  0x1e   : > { %s3370_s22 = smov [#allocation5]   ;;  %s3371_s30 = smov [#allocation8]  }
  0x1f   : > { %s4237_s21 = scalar_select %p3530_p10, 1, 0 }
  0x20   : > { %p2873_p11 = pneg %p3530_p10  ;;  %s463_s23 = sshll.u32 %s3370_s22, 4  ;;  %s3536_s23 = int_to_ptr.vmem [resolvable:$true] %s463_s23 }
  0x21   : > { %s489_s18 = sshll.u32 %s3371_s30, 4  ;;  %s3372_s19 = smov [#allocation11]   ;;  %s3544_s18 = int_to_ptr.vmem [resolvable:$true] %s489_s18 }
  0x22   : > { %p3540_p12 = pnand %p4212_p9, %p2873_p11  ;;  %s3546_s26 = sshll.u32 %s3372_s19, 4  ;;  %s515_s26 = int_to_ptr.vmem [resolvable:$true] %s3546_s26 }
  0x23   : > { %s4239_s4 = sld [smem:[#allocation34_spill]] }
  0x24   : > { %p3556_p0 = pneg %p3540_p12 }
  0x29   : > { %s3034_s24 = scalar_lea.hbm %s4239_s4, 256 }
  0x2a   : > { %p3035_p13 = scmp.ne.s32.totalorder %s4239_s4, %s3034_s24  ;;  %p3041_p3 = scmp.lt.u32.totalorder %s3034_s24, %s4239_s4 }
  0x2c   : > { %p3037_p1 = pnand %p3556_p0, %p3035_p13 }
  0x2e   : > { %p3038_p2 = pneg %p3037_p1 }
  0x30   : > { %p3043_p4 = pnand %p3041_p3, %p3038_p2 }
  0x32   : > { %3046 = shalt.err (!%p3043_p4)
}
  0x33   : > { %s3047_s27 = scalar_lea.vmem %s3536_s23, 256  ;;  %p3055_p9 = scmp.lt.s32.totalorder %s3536_s23, %s3536_s23 }
  0x34   : > { %p3048_p7 = scmp.ne.s32.totalorder %s3536_s23, %s3047_s27  ;;  %p3056_p6 = scmp.lt.s32.totalorder %s3047_s27, %s3047_s27 }
  0x36   : > { %p3050_p8 = pnand %p3048_p7, %p3556_p0  ;;  %p3057_p13 = por %p3056_p6, %p3055_p9 }
  0x38   : > { %p3051_p11 = pneg %p3050_p8 }
  0x3a   : > { %p3058_p1 = pnand %p3057_p13, %p3051_p11 }
  0x3c   : > { %3061 = shalt.err (!%p3058_p1)
}
  0x3d   : > { %s4219_s0 = smov 64   ;;  %s3374_s24 = smov 4  }
  0x3e   : > { %2879 = dma.hbm_to_vmem [thread:$0]  (!%p3540_p12), %s4239_s4, 256, %s3536_s23, [#allocation6], %s4219_s0, %s4219_s0, %s3374_s24  }
  0x3f   : > { %s3062_s27 = scalar_lea.hbm %s4193_s6, 256 }
  0x40   : > { %p3063_p6 = scmp.ne.s32.totalorder %s4193_s6, %s3062_s27  ;;  %p3069_p3 = scmp.lt.u32.totalorder %s3062_s27, %s4193_s6 }
  0x42   : > { %p3065_p9 = pnand %p3063_p6, %p3556_p0 }
  0x44   : > { %p3066_p2 = pneg %p3065_p9 }
  0x46   : > { %p3071_p4 = pnand %p3069_p3, %p3066_p2 }
  0x48   : > { %3074 = shalt.err (!%p3071_p4)
}
  0x49   : > { %s3075_s23 = scalar_lea.vmem %s3544_s18, 256  ;;  %p3083_p13 = scmp.lt.s32.totalorder %s3544_s18, %s3544_s18 }
  0x4a   : > { %p3076_p7 = scmp.ne.s32.totalorder %s3544_s18, %s3075_s23  ;;  %p3084_p1 = scmp.lt.s32.totalorder %s3075_s23, %s3075_s23 }
  0x4c   : > { %p3078_p8 = pnand %p3076_p7, %p3556_p0  ;;  %p3085_p6 = por %p3084_p1, %p3083_p13 }
  0x4e   : > { %p3079_p11 = pneg %p3078_p8 }
  0x50   : > { %p3086_p9 = pnand %p3085_p6, %p3079_p11 }
  0x52   : > { %3089 = shalt.err (!%p3086_p9)
}
  0x53   : > { %2885 = dma.hbm_to_vmem [thread:$0]  (!%p3540_p12), %s4193_s6, 256, %s3544_s18, [#allocation9], %s4219_s0, %s4219_s0, %s3374_s24  }
  0x54   : > { %s3090_s20 = scalar_lea.hbm %s4195_s8, 128 }
  0x55   : > { %p3091_p2 = scmp.ne.s32.totalorder %s4195_s8, %s3090_s20  ;;  %p3097_p7 = scmp.lt.u32.totalorder %s3090_s20, %s4195_s8 }
  0x57   : > { %p3093_p3 = pnand %p3091_p2, %p3556_p0 }
  0x59   : > { %p3094_p4 = pneg %p3093_p3 }
  0x5b   : > { %p3099_p8 = pnand %p3097_p7, %p3094_p4 }
  0x5d   : > { %3102 = shalt.err (!%p3099_p8)
}
  0x5e   : > { %s3103_s23 = scalar_lea.vmem %s515_s26, 128  ;;  %p3111_p6 = scmp.lt.s32.totalorder %s515_s26, %s515_s26 }
  0x5f   : > { %p3104_p11 = scmp.ne.s32.totalorder %s515_s26, %s3103_s23  ;;  %p3112_p9 = scmp.lt.s32.totalorder %s3103_s23, %s3103_s23 }
  0x61   : > { %p3106_p13 = pnand %p3104_p11, %p3556_p0  ;;  %p3113_p5 = por %p3112_p9, %p3111_p6 }
  0x63   : > { %p3107_p1 = pneg %p3106_p13 }
  0x65   : > { %p3114_p10 = pnand %p3113_p5, %p3107_p1 }
  0x67   : > { %3117 = shalt.err (!%p3114_p10)
}
  0x68   : > { %2891 = dma.hbm_to_vmem [thread:$0]  (!%p3540_p12), %s4195_s8, 128, %s515_s26, [#allocation12]  }
  0x69   : > { %s3375_s16 = smov [#allocation14]   ;;  %s3376_s1 = smov [#allocation2]  }
  0x6a   : > { %s536_s25 = sshll.u32 %s3375_s16, 4  ;;  %s450_s20 = sshll.u32 %s3376_s1, 4  ;;  %s537_s25 = int_to_ptr.vmem [resolvable:$true] %s536_s25  ;;  %s451_s20 = int_to_ptr.vmem [resolvable:$true] %s450_s20 }
  0x6b   : > { %s3118_s19 = scalar_lea.hbm %s4197_s10, 128 }
  0x6c   : > { %p3119_p5 = scmp.ne.s32.totalorder %s4197_s10, %s3118_s19  ;;  %p3125_p3 = scmp.lt.u32.totalorder %s3118_s19, %s4197_s10 }
  0x6e   : > { %p3121_p10 = pnand %p3119_p5, %p3556_p0 }
  0x70   : > { %p3122_p2 = pneg %p3121_p10 }
  0x72   : > { %p3127_p4 = pnand %p3125_p3, %p3122_p2 }
  0x74   : > { %3130 = shalt.err (!%p3127_p4)
}
  0x75   : > { %s3131_s26 = scalar_lea.vmem %s537_s25, 128  ;;  %p3139_p13 = scmp.lt.s32.totalorder %s537_s25, %s537_s25 }
  0x76   : > { %p3132_p7 = scmp.ne.s32.totalorder %s537_s25, %s3131_s26  ;;  %p3140_p1 = scmp.lt.s32.totalorder %s3131_s26, %s3131_s26 }
  0x78   : > { %p3134_p8 = pnand %p3132_p7, %p3556_p0  ;;  %p3141_p6 = por %p3140_p1, %p3139_p13 }
  0x7a   : > { %p3135_p11 = pneg %p3134_p8 }
  0x7c   : > { %p3142_p9 = pnand %p3141_p6, %p3135_p11 }
  0x7e   : > { %3145 = shalt.err (!%p3142_p9)
}
  0x7f   : > { %2897 = dma.hbm_to_vmem [thread:$0]  (!%p3540_p12), %s4197_s10, 128, %s537_s25, [#allocation15]  }
  0x80   : > { %s3146_s22 = scalar_lea.hbm %s4190_s3, 256 }
  0x81   : > { %p3147_p5 = scmp.ne.s32.totalorder %s4190_s3, %s3146_s22  ;;  %p3153_p3 = scmp.lt.u32.totalorder %s3146_s22, %s4190_s3 }
  0x83   : > { %p3149_p10 = pnand %p3147_p5, %p3556_p0 }
  0x85   : > { %p3150_p2 = pneg %p3149_p10 }
  0x87   : > { %p3155_p4 = pnand %p3153_p3, %p3150_p2 }
  0x89   : > { %3158 = shalt.err (!%p3155_p4)
}
  0x8a   : > { %s3159_s18 = scalar_lea.vmem %s451_s20, 256  ;;  %p3167_p13 = scmp.lt.s32.totalorder %s451_s20, %s451_s20 }
  0x8b   : > { %p3160_p7 = scmp.ne.s32.totalorder %s451_s20, %s3159_s18  ;;  %p3168_p1 = scmp.lt.s32.totalorder %s3159_s18, %s3159_s18 }
  0x8d   : > { %p3162_p8 = pnand %p3160_p7, %p3556_p0  ;;  %p3169_p6 = por %p3168_p1, %p3167_p13 }
  0x8f   : > { %p3163_p11 = pneg %p3162_p8 }
  0x91   : > { %p3170_p9 = pnand %p3169_p6, %p3163_p11 }
  0x93   : > { %3173 = shalt.err (!%p3170_p9)
}
  0x94   : > { %s4241_s25 = smov 64   ;;  %s3377_s16 = smov [#allocation7]  }
  0x95   : > { %2876 = dma.hbm_to_vmem [thread:$0]  (!%p3540_p12), %s4190_s3, 256, %s451_s20, [#allocation3], %s4241_s25, %s4241_s25, %s3374_s24  }
  0x96   : > { %s476_s0 = sshll.u32 %s3377_s16, 4  ;;  %s3378_s1 = smov [#allocation10]   ;;  %s477_s0 = int_to_ptr.vmem [resolvable:$true] %s476_s0 }
  0x97   : > { %s503_s22 = sshll.u32 %s3378_s1, 4  ;;  %s3174_s27 = scalar_lea.hbm %s4192_s5, 256  ;;  %s504_s22 = int_to_ptr.vmem [resolvable:$true] %s503_s22 }
  0x98   : > { %p3175_p5 = scmp.ne.s32.totalorder %s4192_s5, %s3174_s27  ;;  %p3181_p3 = scmp.lt.u32.totalorder %s3174_s27, %s4192_s5 }
  0x9a   : > { %p3177_p10 = pnand %p3175_p5, %p3556_p0 }
  0x9c   : > { %p3178_p2 = pneg %p3177_p10 }
  0x9e   : > { %p3183_p4 = pnand %p3181_p3, %p3178_p2 }
  0xa0   : > { %3186 = shalt.err (!%p3183_p4)
}
  0xa1   : > { %s3187_s20 = scalar_lea.vmem %s477_s0, 256  ;;  %p3195_p13 = scmp.lt.s32.totalorder %s477_s0, %s477_s0 }
  0xa2   : > { %p3188_p7 = scmp.ne.s32.totalorder %s477_s0, %s3187_s20  ;;  %p3196_p1 = scmp.lt.s32.totalorder %s3187_s20, %s3187_s20 }
  0xa4   : > { %p3190_p8 = pnand %p3188_p7, %p3556_p0  ;;  %p3197_p6 = por %p3196_p1, %p3195_p13 }
  0xa6   : > { %p3191_p11 = pneg %p3190_p8 }
  0xa8   : > { %p3198_p9 = pnand %p3197_p6, %p3191_p11 }
  0xaa   : > { %3201 = shalt.err (!%p3198_p9)
}
  0xab   : > { %2882 = dma.hbm_to_vmem [thread:$0]  (!%p3540_p12), %s4192_s5, 256, %s477_s0, [#allocation6], %s4241_s25, %s4241_s25, %s3374_s24  }
  0xac   : > { %s3202_s30 = scalar_lea.hbm %s4194_s7, 128 }
  0xad   : > { %p3203_p5 = scmp.ne.s32.totalorder %s4194_s7, %s3202_s30  ;;  %p3209_p3 = scmp.lt.u32.totalorder %s3202_s30, %s4194_s7 }
  0xaf   : > { %p3205_p10 = pnand %p3203_p5, %p3556_p0 }
  0xb1   : > { %p3206_p2 = pneg %p3205_p10 }
  0xb3   : > { %p3211_p4 = pnand %p3209_p3, %p3206_p2 }
  0xb5   : > { %3214 = shalt.err (!%p3211_p4)
}
  0xb6   : > { %s3215_s26 = scalar_lea.vmem %s504_s22, 128  ;;  %p3223_p13 = scmp.lt.s32.totalorder %s504_s22, %s504_s22 }
  0xb7   : > { %p3216_p7 = scmp.ne.s32.totalorder %s504_s22, %s3215_s26  ;;  %p3224_p1 = scmp.lt.s32.totalorder %s3215_s26, %s3215_s26 }
  0xb9   : > { %p3218_p8 = pnand %p3216_p7, %p3556_p0  ;;  %p3225_p6 = por %p3224_p1, %p3223_p13 }
  0xbb   : > { %p3219_p11 = pneg %p3218_p8 }
  0xbd   : > { %p3226_p9 = pnand %p3225_p6, %p3219_p11 }
  0xbf   : > { %3229 = shalt.err (!%p3226_p9)
}
  0xc0   : > { %2888 = dma.hbm_to_vmem [thread:$0]  (!%p3540_p12), %s4194_s7, 128, %s504_s22, [#allocation9]  }
  0xc1   : > { %s3379_s0 = smov [#allocation13]   ;;  %s3380_s4 = smov [#allocation16]  }
  0xc2   : > { %s525_s20 = sshll.u32 %s3379_s0, 4  ;;  %s550_s14 = sshll.u32 %s3380_s4, 4  ;;  %s526_s20 = int_to_ptr.vmem [resolvable:$true] %s525_s20  ;;  %s551_s14 = int_to_ptr.vmem [resolvable:$true] %s550_s14 }
  0xc3   : > { %s3230_s30 = scalar_lea.hbm %s4196_s9, 128 }
  0xc4   : > { %p3231_p5 = scmp.ne.s32.totalorder %s4196_s9, %s3230_s30  ;;  %p3237_p3 = scmp.lt.u32.totalorder %s3230_s30, %s4196_s9 }
  0xc6   : > { %p3233_p10 = pnand %p3231_p5, %p3556_p0 }
  0xc8   : > { %p3234_p2 = pneg %p3233_p10 }
  0xca   : > { %p3239_p4 = pnand %p3237_p3, %p3234_p2 }
  0xcc   : > { %3242 = shalt.err (!%p3239_p4)
}
  0xcd   : > { %s3243_s22 = scalar_lea.vmem %s526_s20, 128  ;;  %p3251_p13 = scmp.lt.s32.totalorder %s526_s20, %s526_s20 }
  0xce   : > { %p3244_p7 = scmp.ne.s32.totalorder %s526_s20, %s3243_s22  ;;  %p3252_p1 = scmp.lt.s32.totalorder %s3243_s22, %s3243_s22 }
  0xd0   : > { %p3246_p8 = pnand %p3244_p7, %p3556_p0  ;;  %p3253_p6 = por %p3252_p1, %p3251_p13 }
  0xd2   : > { %p3247_p11 = pneg %p3246_p8 }
  0xd4   : > { %p3254_p9 = pnand %p3253_p6, %p3247_p11 }
  0xd6   : > { %3257 = shalt.err (!%p3254_p9)
}
  0xd7   : > { %2894 = dma.hbm_to_vmem [thread:$0]  (!%p3540_p12), %s4196_s9, 128, %s526_s20, [#allocation12]  }
  0xd8   : > { %s3258_s4 = scalar_lea.hbm %s4199_s12, 128 }
  0xd9   : > { %p3259_p5 = scmp.ne.s32.totalorder %s4199_s12, %s3258_s4  ;;  %p3265_p3 = scmp.lt.u32.totalorder %s3258_s4, %s4199_s12 }
  0xdb   : > { %p3261_p10 = pnand %p3259_p5, %p3556_p0 }
  0xdd   : > { %p3262_p2 = pneg %p3261_p10 }
  0xdf   : > { %p3267_p4 = pnand %p3265_p3, %p3262_p2 }
  0xe1   : > { %3270 = shalt.err (!%p3267_p4)
}
  0xe2   : > { %s3271_s27 = scalar_lea.vmem %s551_s14, 128  ;;  %p3279_p13 = scmp.lt.s32.totalorder %s551_s14, %s551_s14 }
  0xe3   : > { %p3272_p7 = scmp.ne.s32.totalorder %s551_s14, %s3271_s27  ;;  %p3280_p1 = scmp.lt.s32.totalorder %s3271_s27, %s3271_s27 }
  0xe5   : > { %p3274_p8 = pnand %p3272_p7, %p3556_p0  ;;  %p3281_p6 = por %p3280_p1, %p3279_p13 }
  0xe7   : > { %p3275_p11 = pneg %p3274_p8 }
  0xe9   : > { %p3282_p9 = pnand %p3281_p6, %p3275_p11 }
  0xeb   : > { %3285 = shalt.err (!%p3282_p9)
}
  0xec   : > { %2900 = dma.hbm_to_vmem [thread:$0]  (!%p3540_p12), %s4199_s12, 128, %s551_s14, [#allocation15]  }
  0xed   : > { %p4242_p5 = scmp.ne.s32.totalorder %s4237_s21, 0 }
  0xee   : > { %p4243_p10 = scmp.eq.s32.totalorder (!%p4242_p5), %s3502_s28, 0 }
  0xef   : > { %596 = sbr.rel (%p4242_p5) target bundleno = 6997 (0x1b55), region = 88 }
  0xf6   : > { %3331 = dma.done.wait (%p4243_p10), [#allocation3], 256   ;;  %p4244_p0 = pmov %p4243_p10 }
  0xf8   : > { %3333 = vsyncadd (%p4244_p0), [#allocation3], 4294967040  ;;  %p4245_p2 = pmov %p4244_p0 }
  0xf9   : > { %p4246_p3 = pmov %p4244_p0 }
  0xfa   : > { %3335 = dma.done.wait (%p4245_p2), [#allocation6], 512  }
  0xfb   : > { %3337 = vsyncadd (%p4246_p3), [#allocation6], 4294966784  ;;  %p4247_p4 = pmov %p4244_p0 }
  0xfc   : > { %p4248_p12 = pmov %p4244_p0 }
  0xfd   : > { %3339 = dma.done.wait (%p4247_p4), [#allocation9], 384  }
  0xfe   : > { %3341 = vsyncadd (%p4248_p12), [#allocation9], 4294966912  ;;  %p4249_p7 = pmov %p4244_p0 }
  0xff   : > { %p4250_p8 = pmov %p4244_p0 }
 0x100   : > { %3343 = dma.done.wait (%p4249_p7), [#allocation12], 256  }
 0x101   : > { %3345 = vsyncadd (%p4250_p8), [#allocation12], 4294967040  ;;  %p4251_p11 = pmov %p4244_p0 }
 0x102   : > { %p4252_p13 = pmov %p4244_p0 }
 0x103   : > { %3347 = dma.done.wait (%p4251_p11), [#allocation15], 256  }
 0x104   : > { %3349 = vsyncadd (%p4252_p13), [#allocation15], 4294967040  ;;  %p687_p1 = scmp.lt.s32.totalorder %s3502_s28, 1  ;;  %s4253_s18 = sld [smem:[#allocation32_spill]]  ;;  %vm720_vm0 = vcmask 261120   ;;  %v2976_v4 = vld [vmem:[#allocation5] sm:$0xff]  }
 0x105   : > { %v3381_v5 = vmov 0.0   ;;  %s4254_s25 = sld [smem:[#allocation33_spill]]  ;;  %v3782_v6 = vld [vmem:[#allocation2] sm:$0xff]   ;;  %v2977_v7 = vld [vmem:[#allocation5 + $0x8] sm:$0xff]   ;;  %vm3382_vm1 = vmmov 0   ;;  %v3788_v9 = vld [vmem:[#allocation2 + $0x8] sm:$0xff]  }
 0x106   : > { %s688_s17 = scalar_select %p687_p1, %s3502_s28, 1  ;;  %2651 = vmatprep.subr.bf16.mxu1 %v3381_v5  ;;  %2667 = vmatprep.subr.bf16.mxu0 %v3381_v5  ;;  %v2980_v11 = vld [vmem:[#allocation8] sm:$0xff]   ;;  %v2981_v13 = vld [vmem:[#allocation8 + $0x8] sm:$0xff]   ;;  %v3809_v36 = vld [vmem:[#allocation10] sm:$0xff]  ;;  %vm940_vm2 = vcmask 130048   ;;  %vm987_vm3 = vcmask 64512  }
 0x107   : > { %2652 = vmatpush3.bf16.msra.mxu1 %v2976_v4  ;;  %2655 = vmatprep.mubr.msk.bf16.mxu1 %vm3382_vm1, %v3381_v5  ;;  %v3811_v38 = vld [vmem:[#allocation11] sm:$0xff]  ;;  %s3383_s30 = smov 112   ;;  %s3384_s19 = smov 96   ;;  %vm1006_vm4 = vcmask 1043456   ;;  %vm1600_vm5 = vcmask 523264  }
 0x108   : > { %s3763_s21 = sshll.u32 %s688_s17, 3  ;;  %2653 = vmatprep.subr.bf16.mxu1 %v3381_v5  ;;  %2668 = vmatpush3.bf16.msra.mxu0 %v3782_v6  ;;  %s3385_s27 = smov 80  }
 0x109   : > { %2669 = vmatprep.subr.bf16.mxu0 %v3381_v5  ;;  %2671 = vmatprep.mubr.msk.bf16.mxu0 %vm3382_vm1, %v3381_v5  ;;  %s698_s1 = scalar_lea.vmem %s4189_s2, %s3763_s21  ;;  %s3386_s20 = smov 16  }
 0x10a   : > { %s690_s22 = scalar_lea.vmem %s4253_s18, %s3763_s21  ;;  %v702_v12 = vld [vmem:[%s698_s1] sm:$0xff]  ;;  %s4256_s17 = sld [smem:[#allocation35_spill]] }
 0x10b   : > { %v3769_v0 = vld [vmem:[%s690_s22] sm:$0xff]  ;;  %s694_s0 = scalar_lea.vmem %s4254_s25, %s3763_s21  ;;  %2654 = vmatpush3.bf16.msra.mxu1 %v2977_v7  ;;  %v769_v14 = vpack.c.bf16 %v702_v12, %v702_v12  ;;  %s4257_s18 = sld [smem:[#allocation36_spill]] }
 0x10c   : > { %v854_v1 = vsel %vm720_vm0, %v3769_v0, 0.0  ;;  %v863_v2 = vmul.f32 %v3769_v0, %v3769_v0  ;;  %v701_v8 = vld [vmem:[%s694_s0] sm:$0xff]  ;;  %2670 = vmatpush3.bf16.msra.mxu0 %v3788_v9  ;;  %2659 = vmatprep.subr.bf16.mxu1 %v3381_v5  ;;  %s2582_s24 = sshll.u32 %s3502_s28, 7  ;;  %s4259_s4 = sld [smem:[#allocation37_spill]] }
 0x10d   : > { %855 = vadd.xlane.f32.xlu0 %v854_v1  ;;  %v707_v10 = vpack.c.bf16 %v701_v8, %v701_v8  ;;  %2681 = vmatprep.subr.bf16.mxu0 %v3381_v5 }
 0x10e   : > { %v864_v3 = vsel %vm720_vm0, %v863_v2, 0.0 }
 0x10f   : > { %2656 = vmatmul.mubr.msk.bf16.vlgmr.msra.gmra.mrb[0].mxu1 %vm720_vm0, %v707_v10 }
 0x110   : > { %2663 = vmatprep.mubr.msk.bf16.mxu1 %vm3382_vm1, %v3381_v5  ;;  %2660 = vmatpush3.bf16.msra.mxu1 %v2980_v11 }
 0x111   : > { %865 = vadd.xlane.f32.xlu0 %v864_v3  ;;  %2661 = vmatprep.subr.bf16.mxu1 %v3381_v5 }
 0x112   : > { %s4140_s16 = scalar_lea.hbm %s4259_s4, %s2582_s24 }
 0x114   : > { %2662 = vmatpush3.bf16.msra.mxu1 %v2981_v13 }
 0x115   : > { %2675 = vmatprep.subr.bf16.mxu1 %v3381_v5 }
 0x117   : > { %2664 = vmatmul.mubr.msk.bf16.vlgmr.msra.gmra.mrb[4].mxu1 %vm720_vm0, %v769_v14 }
 0x118   : > { %2677 = vmatprep.mubr.msk.bf16.mxu1 %vm3382_vm1, %v3381_v5 }
 0x19a   : > { %v856_v15 = vpop.xlane.xlu0 %855 }
 0x19b   : > { %v857_v16 = vrot.slane %v856_v15, 4 }
 0x19d   : > { %v858_v17 = vadd.f32 %v857_v16, %v856_v15 }
 0x19e   : > { %v866_v18 = vpop.xlane.xlu0 %865 }
 0x19f   : > { %v859_v19 = vrot.slane %v858_v17, 2  ;;  %v867_v20 = vrot.slane %v866_v18, 4 }
 0x1a1   : > { %v860_v21 = vadd.f32 %v859_v19, %v858_v17  ;;  %v868_v22 = vadd.f32 %v867_v20, %v866_v18 }
 0x1a3   : > { %v861_v23 = vrot.slane %v860_v21, 1  ;;  %v869_v24 = vrot.slane %v868_v22, 2 }
 0x1a5   : > { %v862_v25 = vadd.f32 %v861_v23, %v860_v21  ;;  %v870_v26 = vadd.f32 %v869_v24, %v868_v22 }
 0x1a7   : > { %v873_v27 = vmul.f32 0.00390625, %v862_v25  ;;  %v871_v28 = vrot.slane %v870_v26, 1 }
 0x1a9   : > { %v872_v29 = vadd.f32 %v871_v28, %v870_v26  ;;  %v875_v30 = vmul.f32 %v873_v27, %v873_v27  ;;  %v877_v34 = vsub.f32 %v3769_v0, %v873_v27 }
 0x1ab   : > { %v874_v31 = vmul.f32 0.00390625, %v872_v29 }
 0x1ad   : > { %v876_v32 = vsub.f32 %v874_v31, %v875_v30 }
 0x1af   : > { %v878_v33 = vadd.f32 1e-05, %v876_v32 }
 0x1b1   : > { %2990 = vrsqrt.f32 %v878_v33 }
 0x1bb   : > { %v2991_v35 = vpop.eup %2990 }
 0x1bc   : > { %v880_v37 = vmul.f32 %v2991_v35, %v877_v34 }
 0x1be   : > { %v881_v39 = vmul.f32 %v880_v37, %v3809_v36 }
 0x1c0   : > { %v882_v40 = vadd.f32 %v881_v39, %v3811_v38 }
 0x1c2   : > { %v883_v41 = vpack.c.bf16 %v882_v40, %v882_v40 }
 0x1c4   : > { %2672 = vmatmul.mubr.msk.bf16.vlgmr.msra.gmra.mrb[0].mxu0 %vm720_vm0, %v883_v41 }
 0x1c5   : > { %2683 = vmatprep.mubr.msk.bf16.mxu0 %vm3382_vm1, %v3381_v5 }
 0x1e2   : > { %v758_v42 = vpop.f32.mrb[0].mxu1 }
 0x1e3   : > { %v764_v43 = vpack.c.bf16 %v758_v42, %v758_v42  ;;  %v2657_v44 = vpop.f32.mrb[1].mxu1 }
 0x1e4   : > { %v761_v45 = vpop.f32.mrb[2].mxu1 }
 0x1e5   : > { %v2658_v46 = vpop.f32.mrb[3].mxu1  ;;  %1053 = vrot.lane.b32.xlu1 %v764_v43, %s3383_s30  ;;  %v3820_v47 = vsel %vm940_vm2, %v764_v43, 0 }
 0x1e6   : > { %2676 = vmatpush3.bf16.xpose.msra.mxu1 %v3820_v47 }
 0x1e7   : > { %2687 = vmatprep.subr.bf16.mxu1 %v3381_v5 }
 0x1ea   : > { %v3824_v48 = vpop.f32.mrb[4].mxu1 }
 0x1eb   : > { %v2665_v49 = vpop.f32.mrb[5].mxu1  ;;  %v3859_v30 = vpack.c.bf16 %v3824_v48, %v3824_v48 }
 0x1ec   : > { %v822_v50 = vpop.f32.mrb[6].mxu1 }
 0x1ed   : > { %v2666_v51 = vpop.f32.mrb[7].mxu1  ;;  %v3864_v33 = vsel %vm940_vm2, %v3859_v30, 0 }
 0x1ee   : > { %v3882_v51 = vld [vmem:[#allocation7] sm:$0xff]  }
 0x257   : > { %v1054_v52 = vpop.permute.xlu1 %1053 }
 0x258   : > { %v3827_v56 = vsel %vm940_vm2, %v1054_v52, 0  ;;  %v3885_v52 = vld [vmem:[#allocation7 + $0x8] sm:$0xff]  }
 0x297   : > { %v933_v53 = vpop.f32.mrb[0].mxu0 }
 0x298   : > { %v939_v54 = vpack.c.bf16 %v933_v53, %v933_v53  ;;  %v2673_v55 = vpop.f32.mrb[1].mxu0 }
 0x299   : > { %v936_v57 = vpop.f32.mrb[2].mxu0 }
 0x29a   : > { %1051 = vrot.lane.b32.xlu1 %v939_v54, %s3383_s30  ;;  %v2674_v58 = vpop.f32.mrb[3].mxu0  ;;  %2678 = vmatmul.mubr.msk.bf16.vlgmr.msra.gmra.mrb[8].mxu1 %vm940_vm2, %v939_v54 }
 0x29b   : > { %2688 = vmatpush3.bf16.xpose.msra.mxu1 %v3827_v56  ;;  %2689 = vmatprep.mubr.msk.bf16.mxu1 %vm3382_vm1, %v3381_v5 }
 0x29c   : > { %2699 = vmatprep.subr.bf16.mxu1 %v3381_v5 }
 0x30c   : > { %v1052_v59 = vpop.permute.xlu1 %1051 }
 0x30d   : > { %2690 = vmatmul.mubr.msk.bf16.vlgmr.msra.gmra.mrb[12].mxu1 %vm940_vm2, %v1052_v59 }
 0x30e   : > { %2703 = vmatprep.mubr.msk.bf16.mxu1 %vm3382_vm1, %v3381_v5  ;;  %2700 = vmatpush3.bf16.msra.mxu1 %v3882_v51 }
 0x30f   : > { %2701 = vmatprep.subr.bf16.mxu1 %v3381_v5 }
 0x312   : > { %2702 = vmatpush3.bf16.msra.mxu1 %v3885_v52 }
 0x313   : > { %2713 = vmatprep.subr.bf16.mxu1 %v3381_v5 }
 0x36d   : > { %v981_v60 = vpop.f32.mrb[8].mxu1 }
 0x36e   : > { %v2679_v61 = vpop.f32.mrb[9].mxu1  ;;  %v988_v62 = vsel %vm987_vm3, %v981_v60, -inf }
 0x36f   : > { %989 = vmax.xlane.f32.xlu0 %v988_v62  ;;  %v984_v63 = vpop.f32.mrb[10].mxu1 }
 0x370   : > { %v2680_v1 = vpop.f32.mrb[11].mxu1 }
 0x385   : > { %1001 = vrot.lane.b32.xlu0 %v764_v43, %s3384_s19 }
 0x3e0   : > { %v1095_v2 = vpop.f32.mrb[12].mxu1 }
 0x3e1   : > { %v2691_v3 = vpop.f32.mrb[13].mxu1  ;;  %v1101_v4 = vsel %vm987_vm3, %v1095_v2, -inf }
 0x3e2   : > { %1102 = vmax.xlane.f32.xlu1 %v1101_v4  ;;  %v1098_v7 = vpop.f32.mrb[14].mxu1 }
 0x3e3   : > { %v2692_v8 = vpop.f32.mrb[15].mxu1 }
 0x3fc   : > { %v990_v10 = vpop.xlane.xlu0 %989 }
 0x3fd   : > { %v991_v11 = vsub.f32 %v981_v60, %v990_v10 }
 0x3ff   : > { %v992_v12 = vmul.f32 1.442695, %v991_v11 }
 0x400   : > { %v1002_v13 = vpop.permute.xlu0 %1001 }
 0x401   : > { %2992 = vpow2.f32 %v992_v12  ;;  %v3842_v14 = vsel %vm1006_vm4, %v1002_v13, 0 }
 0x402   : > { %2682 = vmatpush3.bf16.msra.mxu0 %v3842_v14 }
 0x403   : > { %2693 = vmatprep.subr.bf16.mxu0 %v3381_v5 }
 0x40b   : > { %v2993_v15 = vpop.eup %2992 }
 0x40c   : > { %v994_v16 = vsel %vm987_vm3, %v2993_v15, 0.0 }
 0x40d   : > { %995 = vadd.xlane.f32.xlu0 %v994_v16 }
 0x46f   : > { %v1103_v17 = vpop.xlane.xlu1 %1102 }
 0x470   : > { %v1104_v18 = vsub.f32 %v1095_v2, %v1103_v17  ;;  %v3893_v17 = vld [vmem:[#allocation14] sm:$0xff] }
 0x472   : > { %v1105_v19 = vmul.f32 1.442695, %v1104_v18 }
 0x474   : > { %2994 = vpow2.f32 %v1105_v19 }
 0x47e   : > { %v2995_v20 = vpop.eup %2994 }
 0x47f   : > { %v1107_v21 = vsel %vm987_vm3, %v2995_v20, 0.0 }
 0x480   : > { %1108 = vadd.xlane.f32.xlu0 %v1107_v21 }
 0x496   : > { %1113 = vrot.lane.b32.xlu0 %v764_v43, %s3385_s27 }
 0x49a   : > { %v996_v22 = vpop.xlane.xlu0 %995 }
 0x49b   : > { %2996 = vrcp.f32 %v996_v22 }
 0x4a5   : > { %v2997_v23 = vpop.eup %2996 }
 0x4a6   : > { %v998_v24 = vmul.f32 %v2997_v23, %v2993_v15  ;;  %v3891_v15 = vld [vmem:[#allocation13] sm:$0xff] }
 0x4a8   : > { %v999_v25 = vpack.c.bf16 %v998_v24, %v998_v24 }
 0x4aa   : > { %2684 = vmatmul.mubr.msk.bf16.vlgmr.msra.gmra.mrb[4].mxu0 %vm987_vm3, %v999_v25 }
 0x4ab   : > { %2695 = vmatprep.mubr.msk.bf16.mxu0 %vm3382_vm1, %v3381_v5 }
 0x50d   : > { %v1109_v26 = vpop.xlane.xlu0 %1108 }
 0x50e   : > { %2998 = vrcp.f32 %v1109_v26 }
 0x511   : > { %v1114_v27 = vpop.permute.xlu0 %1113 }
 0x512   : > { %v3853_v28 = vsel %vm1006_vm4, %v1114_v27, 0 }
 0x513   : > { %2694 = vmatpush3.bf16.msra.mxu0 %v3853_v28 }
 0x514   : > { %2707 = vmatprep.subr.bf16.mxu0 %v3381_v5 }
 0x518   : > { %v2999_v29 = vpop.eup %2998 }
 0x519   : > { %v1111_v31 = vmul.f32 %v2999_v29, %v2995_v20 }
 0x51b   : > { %v1112_v32 = vpack.c.bf16 %v1111_v31, %v1111_v31 }
 0x51d   : > { %2696 = vmatmul.mubr.msk.bf16.vlgmr.msra.gmra.mrb[8].mxu0 %vm987_vm3, %v1112_v32 }
 0x51e   : > { %2708 = vmatpush3.bf16.xpose.msra.mxu0 %v3864_v33  ;;  %2709 = vmatprep.mubr.msk.bf16.mxu0 %vm3382_vm1, %v3381_v5 }
 0x51f   : > { %2719 = vmatprep.subr.bf16.mxu0 %v3381_v5 }
 0x57d   : > { %v1044_v34 = vpop.f32.mrb[4].mxu0 }
 0x57e   : > { %v2685_v35 = vpop.f32.mrb[5].mxu0 }
 0x57f   : > { %v1047_v37 = vpop.f32.mrb[6].mxu0 }
 0x580   : > { %v2686_v39 = vpop.f32.mrb[7].mxu0 }
 0x5f0   : > { %v1155_v40 = vpop.f32.mrb[8].mxu0 }
 0x5f1   : > { %1162 = vrot.lane.b32.xlu1 %v1155_v40, %s3386_s20  ;;  %v2697_v41 = vpop.f32.mrb[9].mxu0 }
 0x5f2   : > { %v1158_v42 = vpop.f32.mrb[10].mxu0 }
 0x5f3   : > { %v2698_v43 = vpop.f32.mrb[11].mxu0 }
 0x663   : > { %v1163_v44 = vpop.permute.xlu1 %1162 }
 0x664   : > { %v1165_v45 = vsel %vm940_vm2, %v1044_v34, %v1163_v44 }
 0x665   : > { %v3873_v46 = vadd.f32 %v1165_v45, %v3769_v0 }
 0x667   : > { %v1167_v48 = vsel %vm720_vm0, %v3873_v46, 0.0  ;;  %v1176_v49 = vmul.f32 %v3873_v46, %v3873_v46 }
 0x668   : > { %1168 = vadd.xlane.f32.xlu0 %v1167_v48 }
 0x669   : > { %v1177_v50 = vsel %vm720_vm0, %v1176_v49, 0.0 }
 0x66a   : > { %1178 = vadd.xlane.f32.xlu1 %v1177_v50 }
 0x67e   : > { %1363 = vrot.lane.b32.xlu0 %v3859_v30, %s3383_s30 }
 0x6f5   : > { %v1169_v0 = vpop.xlane.xlu0 %1168 }
 0x6f6   : > { %v1170_v53 = vrot.slane %v1169_v0, 4 }
 0x6f7   : > { %v1179_v54 = vpop.xlane.xlu1 %1178 }
 0x6f8   : > { %v1171_v55 = vadd.f32 %v1170_v53, %v1169_v0  ;;  %v1180_v57 = vrot.slane %v1179_v54, 4 }
 0x6f9   : > { %v1364_v21 = vpop.permute.xlu0 %1363 }
 0x6fa   : > { %v1172_v58 = vrot.slane %v1171_v55, 2  ;;  %v1181_v59 = vadd.f32 %v1180_v57, %v1179_v54  ;;  %v3901_v26 = vsel %vm940_vm2, %v1364_v21, 0 }
 0x6fc   : > { %v1173_v60 = vadd.f32 %v1172_v58, %v1171_v55  ;;  %v1182_v61 = vrot.slane %v1181_v59, 2 }
 0x6fe   : > { %v1174_v62 = vrot.slane %v1173_v60, 1  ;;  %v1183_v63 = vadd.f32 %v1182_v61, %v1181_v59 }
 0x700   : > { %v1175_v1 = vadd.f32 %v1174_v62, %v1173_v60  ;;  %v1184_v2 = vrot.slane %v1183_v63, 1 }
 0x702   : > { %v1186_v3 = vmul.f32 0.00390625, %v1175_v1  ;;  %v1185_v4 = vadd.f32 %v1184_v2, %v1183_v63 }
 0x704   : > { %v1188_v7 = vmul.f32 %v1186_v3, %v1186_v3  ;;  %v1187_v8 = vmul.f32 0.00390625, %v1185_v4  ;;  %v1190_v12 = vsub.f32 %v3873_v46, %v1186_v3 }
 0x706   : > { %v1189_v10 = vsub.f32 %v1187_v8, %v1188_v7 }
 0x708   : > { %v1191_v11 = vadd.f32 1e-05, %v1189_v10 }
 0x70a   : > { %3000 = vrsqrt.f32 %v1191_v11 }
 0x714   : > { %v3001_v13 = vpop.eup %3000 }
 0x715   : > { %v1193_v16 = vmul.f32 %v3001_v13, %v1190_v12 }
 0x717   : > { %v1194_v18 = vmul.f32 %v1193_v16, %v3891_v15 }
 0x719   : > { %v1195_v19 = vadd.f32 %v1194_v18, %v3893_v17 }
 0x71b   : > { %v1196_v20 = vpack.c.bf16 %v1195_v19, %v1195_v19 }
 0x71d   : > { %2704 = vmatmul.mubr.msk.bf16.vlgmr.msra.gmra.mrb[16].mxu1 %vm720_vm0, %v1196_v20 }
 0x71e   : > { %2715 = vmatprep.mubr.msk.bf16.mxu1 %vm3382_vm1, %v3381_v5 }
 0x7f0   : > { %v1246_v22 = vpop.f32.mrb[16].mxu1 }
 0x7f1   : > { %v1252_v23 = vpack.c.bf16 %v1246_v22, %v1246_v22  ;;  %v2705_v24 = vpop.f32.mrb[17].mxu1 }
 0x7f2   : > { %v1249_v25 = vpop.f32.mrb[18].mxu1 }
 0x7f3   : > { %1361 = vrot.lane.b32.xlu1 %v1252_v23, %s3383_s30  ;;  %v2706_v27 = vpop.f32.mrb[19].mxu1  ;;  %2710 = vmatmul.mubr.msk.bf16.vlgmr.msra.gmra.mrb[12].mxu0 %vm940_vm2, %v1252_v23 }
 0x7f4   : > { %2720 = vmatpush3.bf16.xpose.msra.mxu0 %v3901_v26  ;;  %2721 = vmatprep.mubr.msk.bf16.mxu0 %vm3382_vm1, %v3381_v5  ;;  %v3949_v27 = vld [vmem:[%s4200_s13] sm:$0xff]  }
 0x7f5   : > { %2731 = vmatprep.subr.bf16.mxu0 %v3381_v5 }
 0x865   : > { %v1362_v29 = vpop.permute.xlu1 %1361 }
 0x866   : > { %2722 = vmatmul.mubr.msk.bf16.vlgmr.msra.gmra.mrb[16].mxu0 %vm940_vm2, %v1362_v29  ;;  %v3963_v29 = vld [vmem:[%s4202_s15] sm:$0xff]  }
 0x867   : > { %2735 = vmatprep.mubr.msk.bf16.mxu0 %vm3382_vm1, %v3381_v5  ;;  %2732 = vmatpush3.bf16.msra.mxu0 %v3949_v27 }
 0x868   : > { %2733 = vmatprep.subr.bf16.mxu0 %v3381_v5 }
 0x8c6   : > { %v1293_v31 = vpop.f32.mrb[12].mxu0 }
 0x8c7   : > { %v2711_v32 = vpop.f32.mrb[13].mxu0  ;;  %v1299_v34 = vsel %vm987_vm3, %v1293_v31, -inf }
 0x8c8   : > { %1300 = vmax.xlane.f32.xlu0 %v1299_v34  ;;  %v1296_v35 = vpop.f32.mrb[14].mxu0  ;;  %v3976_v32 = vld [vmem:[%s4202_s15 + $0x10] sm:$0xff]  }
 0x8c9   : > { %v2712_v37 = vpop.f32.mrb[15].mxu0 }
 0x939   : > { %v1405_v39 = vpop.f32.mrb[16].mxu0 }
 0x93a   : > { %v2723_v40 = vpop.f32.mrb[17].mxu0  ;;  %v1411_v41 = vsel %vm987_vm3, %v1405_v39, -inf }
 0x93b   : > { %1412 = vmax.xlane.f32.xlu1 %v1411_v41  ;;  %v1408_v42 = vpop.f32.mrb[18].mxu0 }
 0x93c   : > { %v2724_v43 = vpop.f32.mrb[19].mxu0 }
 0x94c   : > { %1423 = vrot.lane.b32.xlu1 %v3859_v30, %s3385_s27  ;;  %s3387_s27 = smov [#allocation17]  }
 0x94d   : > { %s3290_s23 = sshll.u32 %s3387_s27, 4  ;;  %s3291_s23 = int_to_ptr.vmem [resolvable:$false] %s3290_s23 }
 0x955   : > { %v1301_v44 = vpop.xlane.xlu0 %1300 }
 0x956   : > { %v1302_v45 = vsub.f32 %v1293_v31, %v1301_v44  ;;  %v3969_v31 = vld [vmem:[%s4202_s15 + $0x8] sm:$0xff]  }
 0x958   : > { %v1303_v48 = vmul.f32 1.442695, %v1302_v45 }
 0x95a   : > { %3002 = vpow2.f32 %v1303_v48 }
 0x964   : > { %v3003_v49 = vpop.eup %3002 }
 0x965   : > { %v1305_v50 = vsel %vm987_vm3, %v3003_v49, 0.0 }
 0x966   : > { %1306 = vadd.xlane.f32.xlu0 %v1305_v50 }
 0x9c8   : > { %v1413_v0 = vpop.xlane.xlu1 %1412 }
 0x9c9   : > { %v1414_v53 = vsub.f32 %v1405_v39, %v1413_v0 }
 0x9cb   : > { %v1415_v54 = vmul.f32 1.442695, %v1414_v53 }
 0x9cc   : > { %v1424_v1 = vpop.permute.xlu1 %1423 }
 0x9cd   : > { %3004 = vpow2.f32 %v1415_v54  ;;  %v3926_v3 = vsel %vm1006_vm4, %v1424_v1, 0  ;;  %v3987_v1 = vld [vmem:[#allocation16] sm:$0xff] }
 0x9d7   : > { %v3005_v55 = vpop.eup %3004 }
 0x9d8   : > { %v1417_v57 = vsel %vm987_vm3, %v3005_v55, 0.0 }
 0x9d9   : > { %1418 = vadd.xlane.f32.xlu0 %v1417_v57 }
 0x9ef   : > { %1312 = vrot.lane.b32.xlu0 %v3859_v30, %s3384_s19  ;;  %s4255_s19 = sld [smem:[#allocation25_spill]] }
 0x9f3   : > { %v1307_v58 = vpop.xlane.xlu0 %1306 }
 0x9f4   : > { %3006 = vrcp.f32 %v1307_v58 }
 0x9f5   : > { %s684_s21 = sand.u32 1, %s4255_s19  }
 0x9f6   : > { %s2534_s22 = sshll.u32 %s684_s21, 4  ;;  %s4146_s28 = scalar_lea.sflag [#allocation4], %s684_s21 }
 0x9f7   : > { %s4032_s26 = scalar_lea.vmem [#allocation17], %s2534_s22 }
 0x9fe   : > { %v3007_v59 = vpop.eup %3006 }
 0x9ff   : > { %v1309_v61 = vmul.f32 %v3007_v59, %v3003_v49 }
 0xa01   : > { %v1310_v2 = vpack.c.bf16 %v1309_v61, %v1309_v61  ;;  %v3985_v61 = vld [vmem:[%s4198_s11] sm:$0xff] }
 0xa66   : > { %v1419_v60 = vpop.xlane.xlu0 %1418 }
 0xa67   : > { %3008 = vrcp.f32 %v1419_v60 }
 0xa6a   : > { %v1313_v62 = vpop.permute.xlu0 %1312 }
 0xa6b   : > { %v3921_v63 = vsel %vm1006_vm4, %v1313_v62, 0 }
 0xa6c   : > { %2714 = vmatpush3.bf16.msra.mxu1 %v3921_v63 }
 0xa6d   : > { %2725 = vmatprep.subr.bf16.mxu1 %v3381_v5 }
 0xa6f   : > { %2716 = vmatmul.mubr.msk.bf16.vlgmr.msra.gmra.mrb[20].mxu1 %vm987_vm3, %v1310_v2 }
 0xa70   : > { %2726 = vmatpush3.bf16.msra.mxu1 %v3926_v3  ;;  %2727 = vmatprep.mubr.msk.bf16.mxu1 %vm3382_vm1, %v3381_v5 }
 0xa71   : > { %v3009_v30 = vpop.eup %3008  ;;  %2739 = vmatprep.subr.bf16.mxu1 %v3381_v5 }
 0xa72   : > { %v1421_v4 = vmul.f32 %v3009_v30, %v3005_v55 }
 0xa74   : > { %v1422_v7 = vpack.c.bf16 %v1421_v4, %v1421_v4 }
 0xa77   : > { %2728 = vmatmul.mubr.msk.bf16.vlgmr.msra.gmra.mrb[24].mxu1 %vm987_vm3, %v1422_v7  ;;  %v4001_v7 = vld [vmem:[%s4202_s15 + $0x18] sm:$0xff]  }
 0xa78   : > { %2747 = vmatprep.mubr.msk.bf16.mxu1 %vm3382_vm1, %v3381_v5  ;;  %2740 = vmatpush3.bf16.msra.mxu1 %v3963_v29 }
 0xa79   : > { %2741 = vmatprep.subr.bf16.mxu1 %v3381_v5 }
 0xa7c   : > { %2742 = vmatpush3.bf16.msra.mxu1 %v3969_v31 }
 0xa7d   : > { %2743 = vmatprep.subr.bf16.mxu1 %v3381_v5 }
 0xa80   : > { %2744 = vmatpush3.bf16.msra.mxu1 %v3976_v32 }
 0xa81   : > { %2745 = vmatprep.subr.bf16.mxu1 %v3381_v5 }
 0xa84   : > { %2746 = vmatpush3.bf16.msra.mxu1 %v4001_v7 }
 0xa85   : > { %2765 = vmatprep.subr.bf16.mxu1 %v3381_v5 }
 0xb42   : > { %v1354_v8 = vpop.f32.mrb[20].mxu1 }
 0xb43   : > { %v2717_v10 = vpop.f32.mrb[21].mxu1 }
 0xb44   : > { %v1357_v11 = vpop.f32.mrb[22].mxu1 }
 0xb45   : > { %v2718_v12 = vpop.f32.mrb[23].mxu1 }
 0xb4a   : > { %v1465_v13 = vpop.f32.mrb[24].mxu1 }
 0xb4b   : > { %1472 = vrot.lane.b32.xlu0 %v1465_v13, %s3386_s20  ;;  %v2729_v16 = vpop.f32.mrb[25].mxu1 }
 0xb4c   : > { %v1468_v18 = vpop.f32.mrb[26].mxu1 }
 0xb4d   : > { %v2730_v19 = vpop.f32.mrb[27].mxu1  ;;  %v4020_v18 = vld [vmem:[%s4257_s18] ss:$0 sm:$0xff] }
 0xbbd   : > { %v1473_v20 = vpop.permute.xlu0 %1472 }
 0xbbe   : > { %v1475_v21 = vsel %vm940_vm2, %v1354_v8, %v1473_v20 }
 0xbbf   : > { %v3939_v22 = vadd.f32 %v1475_v21, %v3873_v46  ;;  %v3955_v46 = vld [vmem:[%s4200_s13 + $0x8] sm:$0xff]  }
 0xbc0   : > { %2734 = vmatpush3.bf16.msra.mxu0 %v3955_v46 }
 0xbc1   : > { %v1477_v23 = vsel %vm720_vm0, %v3939_v22, 0.0  ;;  %v1486_v24 = vmul.f32 %v3939_v22, %v3939_v22  ;;  %2751 = vmatprep.subr.bf16.mxu0 %v3381_v5 }
 0xbc2   : > { %1478 = vadd.xlane.f32.xlu0 %v1477_v23 }
 0xbc3   : > { %v1487_v25 = vsel %vm720_vm0, %v1486_v24, 0.0 }
 0xbc4   : > { %1488 = vadd.xlane.f32.xlu1 %v1487_v25 }
 0xc4f   : > { %v1479_v34 = vpop.xlane.xlu0 %1478 }
 0xc50   : > { %v1480_v35 = vrot.slane %v1479_v34, 4 }
 0xc51   : > { %v1489_v37 = vpop.xlane.xlu1 %1488 }
 0xc52   : > { %v1481_v39 = vadd.f32 %v1480_v35, %v1479_v34  ;;  %v1490_v40 = vrot.slane %v1489_v37, 4 }
 0xc54   : > { %v1482_v41 = vrot.slane %v1481_v39, 2  ;;  %v1491_v42 = vadd.f32 %v1490_v40, %v1489_v37 }
 0xc56   : > { %v1483_v43 = vadd.f32 %v1482_v41, %v1481_v39  ;;  %v1492_v44 = vrot.slane %v1491_v42, 2 }
 0xc58   : > { %v1484_v45 = vrot.slane %v1483_v43, 1  ;;  %v1493_v48 = vadd.f32 %v1492_v44, %v1491_v42 }
 0xc5a   : > { %v1485_v49 = vadd.f32 %v1484_v45, %v1483_v43  ;;  %v1494_v50 = vrot.slane %v1493_v48, 1 }
 0xc5c   : > { %v1496_v0 = vmul.f32 0.00390625, %v1485_v49  ;;  %v1495_v53 = vadd.f32 %v1494_v50, %v1493_v48 }
 0xc5e   : > { %v1498_v54 = vmul.f32 %v1496_v0, %v1496_v0  ;;  %v1497_v55 = vmul.f32 0.00390625, %v1495_v53  ;;  %v1500_v59 = vsub.f32 %v3939_v22, %v1496_v0 }
 0xc60   : > { %v1499_v57 = vsub.f32 %v1497_v55, %v1498_v54 }
 0xc62   : > { %v1501_v58 = vadd.f32 1e-05, %v1499_v57 }
 0xc64   : > { %3010 = vrsqrt.f32 %v1501_v58 }
 0xc6e   : > { %v3011_v60 = vpop.eup %3010 }
 0xc6f   : > { %v1503_v62 = vmul.f32 %v3011_v60, %v1500_v59 }
 0xc71   : > { %v1504_v2 = vmul.f32 %v1503_v62, %v3985_v61 }
 0xc73   : > { %v1505_v30 = vadd.f32 %v1504_v2, %v3987_v1 }
 0xc75   : > { %v1506_v4 = vpack.c.bf16 %v1505_v30, %v1505_v30 }
 0xc77   : > { %2736 = vmatmul.mubr.msk.bf16.vlgmr.msra.gmra.mrb[20].mxu0 %vm720_vm0, %v1506_v4 }
 0xc78   : > { %2752 = vmatpush3.bf16.msra.mxu0 %v3782_v6  ;;  %2755 = vmatprep.mubr.msk.bf16.mxu0 %vm3382_vm1, %v3381_v5  ;;  %v4008_v6 = vld [vmem:[%s4256_s17] ss:$0 sm:$0xff]  ;;  %s3292_s17 = scalar_lea.vmem %s3291_s23, 512 }
 0xc79   : > { %2753 = vmatprep.subr.bf16.mxu0 %v3381_v5 }
 0xc7c   : > { %2754 = vmatpush3.bf16.msra.mxu0 %v3788_v9 }
 0xc7d   : > { %2759 = vmatprep.subr.bf16.mxu0 %v3381_v5 }
 0xd4a   : > { %v1562_v8 = vpop.f32.mrb[20].mxu0 }
 0xd4b   : > { %v1563_v9 = vadd.f32 %v4008_v6, %v1562_v8  ;;  %v2737_v10 = vpop.f32.mrb[21].mxu0 }
 0xd4c   : > { %v1565_v11 = vpop.f32.mrb[22].mxu0 }
 0xd4d   : > { %v1568_v12 = vmax.f32 %v1563_v9, 0.0  ;;  %v2738_v13 = vpop.f32.mrb[23].mxu0 }
 0xd4f   : > { %v1569_v16 = vpack.c.bf16 %v1568_v12, %v1568_v12 }
 0xd51   : > { %2748 = vmatmul.mubr.msk.bf16.vlgmr.msra.gmra.mrb[28].mxu1 %vm1600_vm5, %v1569_v16 }
 0xd52   : > { %2766 = vmatpush3.bf16.msra.mxu1 %v3842_v14  ;;  %2767 = vmatprep.mubr.msk.bf16.mxu1 %vm3382_vm1, %v3381_v5 }
 0xd53   : > { %2777 = vmatprep.subr.bf16.mxu1 %v3381_v5 }
 0xe24   : > { %v1638_v19 = vpop.f32.mrb[28].mxu1 }
 0xe25   : > { %v1639_v20 = vadd.f32 %v4020_v18, %v1638_v19  ;;  %v2749_v21 = vpop.f32.mrb[29].mxu1 }
 0xe26   : > { %v1641_v23 = vpop.f32.mrb[30].mxu1 }
 0xe27   : > { %v4026_v14 = vadd.f32 %v1639_v20, %v3939_v22  ;;  %v2750_v24 = vpop.f32.mrb[31].mxu1 }
 0xe29   : > { %v1646_v25 = vsel %vm720_vm0, %v4026_v14, 0.0  ;;  %v1655_v34 = vmul.f32 %v4026_v14, %v4026_v14  ;;  %1645 = vst.msk [vmem:[%s4032_s26] sm:$0xff] %vm720_vm0, %v4026_v14 }
 0xe2a   : > { %1647 = vadd.xlane.f32.xlu0 %v1646_v25 }
 0xe2b   : > { %v1656_v35 = vsel %vm720_vm0, %v1655_v34, 0.0 }
 0xe2e   : > { %1657 = vadd.xlane.f32.xlu0 %v1656_v35 }
 0xeb7   : > { %v1648_v37 = vpop.xlane.xlu0 %1647 }
 0xeb8   : > { %v1649_v22 = vrot.slane %v1648_v37, 4 }
 0xeba   : > { %v1650_v39 = vadd.f32 %v1649_v22, %v1648_v37 }
 0xebb   : > { %v1658_v40 = vpop.xlane.xlu0 %1657 }
 0xebc   : > { %v1651_v41 = vrot.slane %v1650_v39, 2  ;;  %v1659_v42 = vrot.slane %v1658_v40, 4 }
 0xebe   : > { %v1652_v43 = vadd.f32 %v1651_v41, %v1650_v39  ;;  %v1660_v44 = vadd.f32 %v1659_v42, %v1658_v40 }
 0xec0   : > { %v1653_v45 = vrot.slane %v1652_v43, 1  ;;  %v1661_v48 = vrot.slane %v1660_v44, 2 }
 0xec2   : > { %v1654_v49 = vadd.f32 %v1653_v45, %v1652_v43  ;;  %v1662_v50 = vadd.f32 %v1661_v48, %v1660_v44 }
 0xec4   : > { %v1665_v0 = vmul.f32 0.00390625, %v1654_v49  ;;  %v1663_v53 = vrot.slane %v1662_v50, 1 }
 0xec6   : > { %v1664_v54 = vadd.f32 %v1663_v53, %v1662_v50  ;;  %v1667_v55 = vmul.f32 %v1665_v0, %v1665_v0  ;;  %v1669_v60 = vsub.f32 %v4026_v14, %v1665_v0 }
 0xec8   : > { %v1666_v57 = vmul.f32 0.00390625, %v1664_v54 }
 0xeca   : > { %v1668_v58 = vsub.f32 %v1666_v57, %v1667_v55 }
 0xecc   : > { %v1670_v59 = vadd.f32 1e-05, %v1668_v58 }
 0xece   : > { %3012 = vrsqrt.f32 %v1670_v59 }
 0xed8   : > { %v3013_v62 = vpop.eup %3012 }
 0xed9   : > { %v1672_v2 = vmul.f32 %v3013_v62, %v1669_v60 }
 0xedb   : > { %v1673_v30 = vmul.f32 %v1672_v2, %v3809_v36 }
 0xedd   : > { %v1674_v4 = vadd.f32 %v1673_v30, %v3811_v38 }
 0xedf   : > { %v1675_v8 = vpack.c.bf16 %v1674_v4, %v1674_v4 }
 0xee1   : > { %2756 = vmatmul.mubr.msk.bf16.vlgmr.msra.gmra.mrb[24].mxu0 %vm720_vm0, %v1675_v8 }
 0xee2   : > { %2760 = vmatpush3.bf16.xpose.msra.mxu0 %v3820_v47  ;;  %2761 = vmatprep.mubr.msk.bf16.mxu0 %vm3382_vm1, %v3381_v5 }
 0xee3   : > { %2771 = vmatprep.subr.bf16.mxu0 %v3381_v5 }
 0xfb4   : > { %v1713_v9 = vpop.f32.mrb[24].mxu0 }
 0xfb5   : > { %v1719_v10 = vpack.c.bf16 %v1713_v9, %v1713_v9  ;;  %v2757_v11 = vpop.f32.mrb[25].mxu0 }
 0xfb6   : > { %v1716_v12 = vpop.f32.mrb[26].mxu0 }
 0xfb7   : > { %1819 = vrot.lane.b32.xlu0 %v1719_v10, %s3383_s30  ;;  %v2758_v13 = vpop.f32.mrb[27].mxu0  ;;  %2762 = vmatmul.mubr.msk.bf16.vlgmr.msra.gmra.mrb[28].mxu0 %vm940_vm2, %v1719_v10 }
 0xfb8   : > { %2772 = vmatpush3.bf16.xpose.msra.mxu0 %v3827_v56  ;;  %2773 = vmatprep.mubr.msk.bf16.mxu0 %vm3382_vm1, %v3381_v5 }
 0xfb9   : > { %2783 = vmatprep.subr.bf16.mxu0 %v3381_v5 }
0x1029   : > { %v1820_v36 = vpop.permute.xlu0 %1819 }
0x102a   : > { %2774 = vmatmul.mubr.msk.bf16.vlgmr.msra.gmra.mrb[32].mxu0 %vm940_vm2, %v1820_v36 }
0x102b   : > { %2784 = vmatpush3.bf16.msra.mxu0 %v3882_v51  ;;  %2787 = vmatprep.mubr.msk.bf16.mxu0 %vm3382_vm1, %v3381_v5 }
0x102c   : > { %2785 = vmatprep.subr.bf16.mxu0 %v3381_v5 }
0x102f   : > { %2786 = vmatpush3.bf16.msra.mxu0 %v3885_v52 }
0x1030   : > { %2797 = vmatprep.subr.bf16.mxu0 %v3381_v5 }
0x108a   : > { %v1757_v38 = vpop.f32.mrb[28].mxu0 }
0x108b   : > { %v2763_v47 = vpop.f32.mrb[29].mxu0  ;;  %v1763_v56 = vsel %vm987_vm3, %v1757_v38, -inf }
0x108c   : > { %1764 = vmax.xlane.f32.xlu1 %v1763_v56  ;;  %v1760_v16 = vpop.f32.mrb[30].mxu0 }
0x108d   : > { %v2764_v19 = vpop.f32.mrb[31].mxu0 }
0x10fd   : > { %v1858_v20 = vpop.f32.mrb[32].mxu0 }
0x10fe   : > { %v2775_v21 = vpop.f32.mrb[33].mxu0  ;;  %v1864_v51 = vsel %vm987_vm3, %v1858_v20, -inf }
0x10ff   : > { %1865 = vmax.xlane.f32.xlu1 %v1864_v51  ;;  %v1861_v23 = vpop.f32.mrb[34].mxu0 }
0x1100   : > { %v2776_v24 = vpop.f32.mrb[35].mxu0 }
0x1119   : > { %v1765_v25 = vpop.xlane.xlu1 %1764 }
0x111a   : > { %v1766_v34 = vsub.f32 %v1757_v38, %v1765_v25 }
0x111c   : > { %v1767_v35 = vmul.f32 1.442695, %v1766_v34 }
0x111e   : > { %3014 = vpow2.f32 %v1767_v35 }
0x1128   : > { %v3015_v52 = vpop.eup %3014 }
0x1129   : > { %v1769_v37 = vsel %vm987_vm3, %v3015_v52, 0.0 }
0x112a   : > { %1770 = vadd.xlane.f32.xlu1 %v1769_v37 }
0x118c   : > { %v1866_v22 = vpop.xlane.xlu1 %1865 }
0x118d   : > { %v1867_v39 = vsub.f32 %v1858_v20, %v1866_v22 }
0x118f   : > { %v1868_v40 = vmul.f32 1.442695, %v1867_v39 }
0x1191   : > { %3016 = vpow2.f32 %v1868_v40 }
0x119b   : > { %v3017_v41 = vpop.eup %3016 }
0x119c   : > { %v1870_v42 = vsel %vm987_vm3, %v3017_v41, 0.0 }
0x119d   : > { %1871 = vadd.xlane.f32.xlu1 %v1870_v42 }
0x11b7   : > { %v1771_v43 = vpop.xlane.xlu1 %1770 }
0x11b8   : > { %3018 = vrcp.f32 %v1771_v43 }
0x11c2   : > { %v3019_v44 = vpop.eup %3018 }
0x11c3   : > { %v1773_v45 = vmul.f32 %v3019_v44, %v3015_v52 }
0x11c5   : > { %v1774_v48 = vpack.c.bf16 %v1773_v45, %v1773_v45 }
0x11c7   : > { %2768 = vmatmul.mubr.msk.bf16.vlgmr.msra.gmra.mrb[32].mxu1 %vm987_vm3, %v1774_v48 }
0x11c8   : > { %2778 = vmatpush3.bf16.msra.mxu1 %v3853_v28  ;;  %2779 = vmatprep.mubr.msk.bf16.mxu1 %vm3382_vm1, %v3381_v5 }
0x11c9   : > { %2791 = vmatprep.subr.bf16.mxu1 %v3381_v5 }
0x122a   : > { %v1872_v49 = vpop.xlane.xlu1 %1871 }
0x122b   : > { %3020 = vrcp.f32 %v1872_v49 }
0x1235   : > { %v3021_v50 = vpop.eup %3020 }
0x1236   : > { %v1874_v0 = vmul.f32 %v3021_v50, %v3017_v41 }
0x1238   : > { %v1875_v53 = vpack.c.bf16 %v1874_v0, %v1874_v0 }
0x123a   : > { %2780 = vmatmul.mubr.msk.bf16.vlgmr.msra.gmra.mrb[36].mxu1 %vm987_vm3, %v1875_v53 }
0x123b   : > { %2792 = vmatpush3.bf16.xpose.msra.mxu1 %v3864_v33  ;;  %2793 = vmatprep.mubr.msk.bf16.mxu1 %vm3382_vm1, %v3381_v5 }
0x123c   : > { %2803 = vmatprep.subr.bf16.mxu1 %v3381_v5 }
0x129a   : > { %v1812_v28 = vpop.f32.mrb[32].mxu1 }
0x129b   : > { %v2769_v54 = vpop.f32.mrb[33].mxu1 }
0x129c   : > { %v1815_v55 = vpop.f32.mrb[34].mxu1 }
0x129d   : > { %v2770_v57 = vpop.f32.mrb[35].mxu1 }
0x130d   : > { %v1913_v58 = vpop.f32.mrb[36].mxu1 }
0x130e   : > { %1920 = vrot.lane.b32.xlu1 %v1913_v58, %s3386_s20  ;;  %v2781_v59 = vpop.f32.mrb[37].mxu1 }
0x130f   : > { %v1916_v60 = vpop.f32.mrb[38].mxu1 }
0x1310   : > { %v2782_v62 = vpop.f32.mrb[39].mxu1 }
0x1380   : > { %v1921_v2 = vpop.permute.xlu1 %1920 }
0x1381   : > { %v1923_v30 = vsel %vm940_vm2, %v1812_v28, %v1921_v2 }
0x1382   : > { %v4076_v33 = vadd.f32 %v1923_v30, %v4026_v14 }
0x1384   : > { %v1925_v4 = vsel %vm720_vm0, %v4076_v33, 0.0  ;;  %v1934_v8 = vmul.f32 %v4076_v33, %v4076_v33 }
0x1385   : > { %1926 = vadd.xlane.f32.xlu0 %v1925_v4 }
0x1386   : > { %v1935_v9 = vsel %vm720_vm0, %v1934_v8, 0.0 }
0x1387   : > { %1936 = vadd.xlane.f32.xlu1 %v1935_v9 }
0x1412   : > { %v1927_v10 = vpop.xlane.xlu0 %1926 }
0x1413   : > { %v1928_v11 = vrot.slane %v1927_v10, 4 }
0x1414   : > { %v1937_v12 = vpop.xlane.xlu1 %1936 }
0x1415   : > { %v1929_v13 = vadd.f32 %v1928_v11, %v1927_v10  ;;  %v1938_v36 = vrot.slane %v1937_v12, 4 }
0x1417   : > { %v1930_v38 = vrot.slane %v1929_v13, 2  ;;  %v1939_v47 = vadd.f32 %v1938_v36, %v1937_v12 }
0x1419   : > { %v1931_v56 = vadd.f32 %v1930_v38, %v1929_v13  ;;  %v1940_v14 = vrot.slane %v1939_v47, 2 }
0x141b   : > { %v1932_v16 = vrot.slane %v1931_v56, 1  ;;  %v1941_v19 = vadd.f32 %v1940_v14, %v1939_v47 }
0x141d   : > { %v1933_v20 = vadd.f32 %v1932_v16, %v1931_v56  ;;  %v1942_v21 = vrot.slane %v1941_v19, 1 }
0x141f   : > { %v1944_v51 = vmul.f32 0.00390625, %v1933_v20  ;;  %v1943_v23 = vadd.f32 %v1942_v21, %v1941_v19 }
0x1421   : > { %v1946_v24 = vmul.f32 %v1944_v51, %v1944_v51  ;;  %v1945_v25 = vmul.f32 0.00390625, %v1943_v23  ;;  %v1948_v52 = vsub.f32 %v4076_v33, %v1944_v51 }
0x1423   : > { %v1947_v34 = vsub.f32 %v1945_v25, %v1946_v24 }
0x1425   : > { %v1949_v35 = vadd.f32 1e-05, %v1947_v34 }
0x1427   : > { %3022 = vrsqrt.f32 %v1949_v35 }
0x1431   : > { %v3023_v37 = vpop.eup %3022 }
0x1432   : > { %v1951_v22 = vmul.f32 %v3023_v37, %v1948_v52 }
0x1434   : > { %v1952_v39 = vmul.f32 %v1951_v22, %v3891_v15 }
0x1436   : > { %v1953_v40 = vadd.f32 %v1952_v39, %v3893_v17 }
0x1438   : > { %v1954_v41 = vpack.c.bf16 %v1953_v40, %v1953_v40 }
0x143a   : > { %2788 = vmatmul.mubr.msk.bf16.vlgmr.msra.gmra.mrb[36].mxu0 %vm720_vm0, %v1954_v41 }
0x143b   : > { %2798 = vmatpush3.bf16.msra.mxu0 %v3921_v63  ;;  %2799 = vmatprep.mubr.msk.bf16.mxu0 %vm3382_vm1, %v3381_v5 }
0x143c   : > { %2809 = vmatprep.subr.bf16.mxu0 %v3381_v5 }
0x150d   : > { %v1992_v42 = vpop.f32.mrb[36].mxu0 }
0x150e   : > { %v1998_v43 = vpack.c.bf16 %v1992_v42, %v1992_v42  ;;  %v2789_v44 = vpop.f32.mrb[37].mxu0 }
0x150f   : > { %v1995_v45 = vpop.f32.mrb[38].mxu0 }
0x1510   : > { %2098 = vrot.lane.b32.xlu0 %v1998_v43, %s3383_s30  ;;  %v2790_v48 = vpop.f32.mrb[39].mxu0  ;;  %2794 = vmatmul.mubr.msk.bf16.vlgmr.msra.gmra.mrb[40].mxu1 %vm940_vm2, %v1998_v43  ;;  %s4258_s30 = sld [smem:[#allocation30_spill]] }
0x1511   : > { %2804 = vmatpush3.bf16.xpose.msra.mxu1 %v3901_v26  ;;  %2805 = vmatprep.mubr.msk.bf16.mxu1 %vm3382_vm1, %v3381_v5 }
0x1512   : > { %2815 = vmatprep.subr.bf16.mxu1 %v3381_v5 }
0x1516   : > { %p4260_p9 = scmp.ne.s32.totalorder %s4258_s30, 0 }
0x1582   : > { %v2099_v15 = vpop.permute.xlu0 %2098 }
0x1583   : > { %2806 = vmatmul.mubr.msk.bf16.vlgmr.msra.gmra.mrb[44].mxu1 %vm940_vm2, %v2099_v15 }
0x1584   : > { %2816 = vmatpush3.bf16.msra.mxu1 %v3949_v27  ;;  %2819 = vmatprep.mubr.msk.bf16.mxu1 %vm3382_vm1, %v3381_v5 }
0x1585   : > { %2817 = vmatprep.subr.bf16.mxu1 %v3381_v5 }
0x1588   : > { %2818 = vmatpush3.bf16.msra.mxu1 %v3955_v46 }
0x15e3   : > { %v2036_v17 = vpop.f32.mrb[40].mxu1 }
0x15e4   : > { %v2795_v63 = vpop.f32.mrb[41].mxu1  ;;  %v2042_v26 = vsel %vm987_vm3, %v2036_v17, -inf }
0x15e5   : > { %2043 = vmax.xlane.f32.xlu1 %v2042_v26  ;;  %v2039_v49 = vpop.f32.mrb[42].mxu1 }
0x15e6   : > { %v2796_v50 = vpop.f32.mrb[43].mxu1 }
0x1656   : > { %v2137_v0 = vpop.f32.mrb[44].mxu1 }
0x1657   : > { %v2807_v53 = vpop.f32.mrb[45].mxu1  ;;  %v2143_v28 = vsel %vm987_vm3, %v2137_v0, -inf }
0x1658   : > { %2144 = vmax.xlane.f32.xlu1 %v2143_v28  ;;  %v2140_v27 = vpop.f32.mrb[46].mxu1 }
0x1659   : > { %v2808_v54 = vpop.f32.mrb[47].mxu1 }
0x1672   : > { %v2044_v55 = vpop.xlane.xlu1 %2043 }
0x1673   : > { %v2045_v57 = vsub.f32 %v2036_v17, %v2044_v55 }
0x1675   : > { %v2046_v58 = vmul.f32 1.442695, %v2045_v57 }
0x1677   : > { %3024 = vpow2.f32 %v2046_v58 }
0x1681   : > { %v3025_v59 = vpop.eup %3024 }
0x1682   : > { %v2048_v46 = vsel %vm987_vm3, %v3025_v59, 0.0 }
0x1683   : > { %2049 = vadd.xlane.f32.xlu0 %v2048_v46 }
0x16e5   : > { %v2145_v60 = vpop.xlane.xlu1 %2144 }
0x16e6   : > { %v2146_v62 = vsub.f32 %v2137_v0, %v2145_v60 }
0x16e8   : > { %v2147_v2 = vmul.f32 1.442695, %v2146_v62 }
0x16ea   : > { %3026 = vpow2.f32 %v2147_v2 }
0x16f4   : > { %v3027_v30 = vpop.eup %3026 }
0x16f5   : > { %v2149_v4 = vsel %vm987_vm3, %v3027_v30, 0.0 }
0x16f6   : > { %2150 = vadd.xlane.f32.xlu1 %v2149_v4 }
0x1710   : > { %v2050_v8 = vpop.xlane.xlu0 %2049 }
0x1711   : > { %3028 = vrcp.f32 %v2050_v8 }
0x171b   : > { %v3029_v9 = vpop.eup %3028 }
0x171c   : > { %v2052_v10 = vmul.f32 %v3029_v9, %v3025_v59 }
0x171e   : > { %v2053_v11 = vpack.c.bf16 %v2052_v10, %v2052_v10 }
0x1720   : > { %2800 = vmatmul.mubr.msk.bf16.vlgmr.msra.gmra.mrb[40].mxu0 %vm987_vm3, %v2053_v11 }
0x1721   : > { %2810 = vmatpush3.bf16.msra.mxu0 %v3926_v3  ;;  %2811 = vmatprep.mubr.msk.bf16.mxu0 %vm3382_vm1, %v3381_v5 }
0x1722   : > { %2823 = vmatprep.subr.bf16.mxu0 %v3381_v5 }
0x1783   : > { %v2151_v12 = vpop.xlane.xlu1 %2150 }
0x1784   : > { %3030 = vrcp.f32 %v2151_v12 }
0x178e   : > { %v3031_v13 = vpop.eup %3030 }
0x178f   : > { %v2153_v36 = vmul.f32 %v3031_v13, %v3027_v30 }
0x1791   : > { %v2154_v38 = vpack.c.bf16 %v2153_v36, %v2153_v36 }
0x1793   : > { %2812 = vmatmul.mubr.msk.bf16.vlgmr.msra.gmra.mrb[44].mxu0 %vm987_vm3, %v2154_v38 }
0x1794   : > { %2824 = vmatpush3.bf16.msra.mxu0 %v3963_v29  ;;  %2831 = vmatprep.mubr.msk.bf16.mxu0 %vm3382_vm1, %v3381_v5 }
0x1795   : > { %2825 = vmatprep.subr.bf16.mxu0 %v3381_v5 }
0x1798   : > { %2826 = vmatpush3.bf16.msra.mxu0 %v3969_v31 }
0x1799   : > { %2827 = vmatprep.subr.bf16.mxu0 %v3381_v5 }
0x179c   : > { %2828 = vmatpush3.bf16.msra.mxu0 %v3976_v32 }
0x179d   : > { %2829 = vmatprep.subr.bf16.mxu0 %v3381_v5 }
0x17a0   : > { %2830 = vmatpush3.bf16.msra.mxu0 %v4001_v7 }
0x17f3   : > { %v2091_v3 = vpop.f32.mrb[40].mxu0 }
0x17f4   : > { %v2801_v47 = vpop.f32.mrb[41].mxu0 }
0x17f5   : > { %v2094_v56 = vpop.f32.mrb[42].mxu0 }
0x17f6   : > { %v2802_v14 = vpop.f32.mrb[43].mxu0 }
0x1866   : > { %v2192_v29 = vpop.f32.mrb[44].mxu0 }
0x1867   : > { %2199 = vrot.lane.b32.xlu1 %v2192_v29, %s3386_s20  ;;  %v2813_v16 = vpop.f32.mrb[45].mxu0  ;;  %s2338_s20 = sshll.u32 %s4032_s26, 4  ;;  %s4135_s20 = int_to_ptr.vmem [resolvable:$true] %s2338_s20 }
0x1868   : > { %v2195_v19 = vpop.f32.mrb[46].mxu0  ;;  %s3286_s1 = scalar_lea.vmem %s4135_s20, 256  ;;  %p3293_p0 = scmp.lt.s32.totalorder %s4135_s20, %s3291_s23 }
0x1869   : > { %v2814_v20 = vpop.f32.mrb[47].mxu0  ;;  %p3287_p6 = scmp.ne.s32.totalorder %s4135_s20, %s3286_s1  ;;  %p3294_p2 = scmp.lt.s32.totalorder %s3292_s17, %s3286_s1 }
0x186b   : > { %p3288_p5 = pnand %p3287_p6, %p4260_p9  ;;  %p3295_p3 = por %p3294_p2, %p3293_p0 }
0x186d   : > { %p3289_p10 = pneg %p3288_p5 }
0x186f   : > { %p3296_p4 = pnand %p3295_p3, %p3289_p10 }
0x18d9   : > { %v2200_v21 = vpop.permute.xlu1 %2199 }
0x18da   : > { %v2202_v31 = vsel %vm940_vm2, %v2091_v3, %v2200_v21 }
0x18db   : > { %v2203_v51 = vadd.f32 %v2202_v31, %v4076_v33 }
0x18dd   : > { %v2204_v32 = vsel %vm720_vm0, %v2203_v51, 0.0  ;;  %v2213_v5 = vmul.f32 %v2203_v51, %v2203_v51 }
0x18de   : > { %2205 = vadd.xlane.f32.xlu1 %v2204_v32 }
0x18df   : > { %v2214_v7 = vsel %vm720_vm0, %v2213_v5, 0.0 }
0x18e0   : > { %2215 = vadd.xlane.f32.xlu0 %v2214_v7 }
0x196b   : > { %v2206_v23 = vpop.xlane.xlu1 %2205 }
0x196c   : > { %v2207_v24 = vrot.slane %v2206_v23, 4 }
0x196d   : > { %v2216_v25 = vpop.xlane.xlu0 %2215 }
0x196e   : > { %v2208_v34 = vadd.f32 %v2207_v24, %v2206_v23  ;;  %v2217_v35 = vrot.slane %v2216_v25, 4 }
0x1970   : > { %v2209_v52 = vrot.slane %v2208_v34, 2  ;;  %v2218_v37 = vadd.f32 %v2217_v35, %v2216_v25 }
0x1972   : > { %v2210_v22 = vadd.f32 %v2209_v52, %v2208_v34  ;;  %v2219_v39 = vrot.slane %v2218_v37, 2 }
0x1974   : > { %v2211_v40 = vrot.slane %v2210_v22, 1  ;;  %v2220_v41 = vadd.f32 %v2219_v39, %v2218_v37 }
0x1976   : > { %v2212_v42 = vadd.f32 %v2211_v40, %v2210_v22  ;;  %v2221_v33 = vrot.slane %v2220_v41, 1 }
0x1978   : > { %v2223_v43 = vmul.f32 0.00390625, %v2212_v42  ;;  %v2222_v44 = vadd.f32 %v2221_v33, %v2220_v41 }
0x197a   : > { %v2225_v45 = vmul.f32 %v2223_v43, %v2223_v43  ;;  %v2224_v48 = vmul.f32 0.00390625, %v2222_v44  ;;  %v2227_v63 = vsub.f32 %v2203_v51, %v2223_v43 }
0x197c   : > { %v2226_v15 = vsub.f32 %v2224_v48, %v2225_v45 }
0x197e   : > { %v2228_v17 = vadd.f32 1e-05, %v2226_v15 }
0x1980   : > { %3032 = vrsqrt.f32 %v2228_v17 }
0x198a   : > { %v3033_v26 = vpop.eup %3032 }
0x198b   : > { %v2230_v49 = vmul.f32 %v3033_v26, %v2227_v63 }
0x198d   : > { %v2231_v50 = vmul.f32 %v2230_v49, %v3985_v61 }
0x198f   : > { %v2232_v0 = vadd.f32 %v2231_v50, %v3987_v1 }
0x1991   : > { %v2233_v53 = vpack.c.bf16 %v2232_v0, %v2232_v0 }
0x1993   : > { %2820 = vmatmul.mubr.msk.bf16.vlgmr.msra.gmra.mrb[48].mxu1 %vm720_vm0, %v2233_v53 }
0x1a66   : > { %v2271_v28 = vpop.f32.mrb[48].mxu1 }
0x1a67   : > { %v2272_v27 = vadd.f32 %v4008_v6, %v2271_v28  ;;  %v2821_v54 = vpop.f32.mrb[49].mxu1 }
0x1a68   : > { %v2274_v55 = vpop.f32.mrb[50].mxu1 }
0x1a69   : > { %v2277_v57 = vmax.f32 %v2272_v27, 0.0  ;;  %v2822_v58 = vpop.f32.mrb[51].mxu1 }
0x1a6b   : > { %v2278_v59 = vpack.c.bf16 %v2277_v57, %v2277_v57 }
0x1a6d   : > { %2832 = vmatmul.mubr.msk.bf16.vlgmr.msra.gmra.mrb[48].mxu0 %vm1600_vm5, %v2278_v59 }
0x1b40   : > { %v2316_v61 = vpop.f32.mrb[48].mxu0 }
0x1b41   : > { %v2317_v1 = vadd.f32 %v4020_v18, %v2316_v61  ;;  %v2833_v6 = vpop.f32.mrb[49].mxu0 }
0x1b42   : > { %v2319_v46 = vpop.f32.mrb[50].mxu0 }
0x1b43   : > { %v2322_v60 = vadd.f32 %v2317_v1, %v2203_v51  ;;  %v2834_v62 = vpop.f32.mrb[51].mxu0 }
0x1b45   : > { %2580 = vst.msk [vmem:[%s4032_s26 + $0x8] sm:$0xff] %vm720_vm0, %v2322_v60 }
0x1b46   : > { %3299 = shalt.err (!%p3296_p4)
}
0x1b47   : > { %s3300_s19 = scalar_lea.hbm %s4140_s16, 256  ;;  %s3304_s14 = scalar_lea.hbm %s4259_s4, 512 }
0x1b48   : > { %p3301_p12 = scmp.ne.s32.totalorder %s4140_s16, %s3300_s19  ;;  %p3305_p11 = scmp.lt.u32.totalorder %s4140_s16, %s4259_s4 }
0x1b49   : > { %p3306_p13 = scmp.lt.u32.totalorder %s3304_s14, %s3300_s19  ;;  %p3308_p6 = scmp.lt.u32.totalorder %s3300_s19, %s4140_s16 }
0x1b4a   : > { %p3302_p7 = pnand %p3301_p12, %p4260_p9 }
0x1b4b   : > { %p3307_p1 = por %p3306_p13, %p3305_p11 }
0x1b4c   : > { %p3303_p8 = pneg %p3302_p7 }
0x1b4d   : > { %p3309_p5 = por %p3308_p6, %p3307_p1 }
0x1b4f   : > { %p3310_p10 = pnand %p3309_p5, %p3303_p8 }
0x1b51   : > { %3313 = shalt.err (!%p3310_p10)
}
0x1b52   : > { %s3388_s26 = smov 128   ;;  %s3389_s24 = smov 256  }
0x1b53   : > { %s3390_s25 = smov 8  }
0x1b54   : > { %2871 = dma.vmem_to_hbm [thread:$0]  (%p4260_p9), %s4135_s20, 256, %s4140_s16, %s4146_s28, %s3388_s26, %s3389_s24, %s3390_s25  }
0x1b55 PF: > { %s4261_s0 = sld [smem:[#allocation27_spill]]  ;;  %s4262_s1 = sld [smem:[#allocation24_spill]] }
0x1b56   : > { %s4263_s27 = sld [smem:[#allocation31_spill]] }
0x1b5b   : > { %p2923_p0 = scmp.ge.s32.totalorder %s4261_s0, 2  ;;  %s2353_s23 = sand.u32 1, %s4262_s1  }
0x1b5c   : > { %p4264_p2 = scmp.ne.s32.totalorder %s4263_s27, 0  ;;  %s2354_s17 = scalar_lea.sflag [#allocation4], %s2353_s23 }
0x1b5e   : > { %p2902_p3 = pnand %p2923_p0, %p4264_p2 }
0x1b60   : > { %3351 = dma.done.wait (!%p2902_p3), %s2354_s17, 256  }
0x1b61   : > { %3353 = vsyncadd (!%p2902_p3), %s2354_s17, 4294967040  ;;  %s4265_s27 = sld [smem:[#allocation28_spill]]  ;;  %s4266_s24 = sld [smem:[#allocation25_spill]] }
0x1b62   : > { %s4267_s25 = sld [smem:[#allocation26_spill]]  ;;  %s4268_s26 = sld [smem:[#allocation29_spill]] }
0x1b67   : > { %p32_p4 = scmp.ge.s32.totalorder %s4265_s27, 4  }
0x1b69   :  { %34 = sbr.rel (!%p32_p4) target bundleno = 15 (0xf), region = 167 }
0x1b70   :  { %2359 = vsyncpa [#allocation3], 1 }
0x1b71   :  { %2361 = vsyncpa [#allocation3 + $0x1], 1 }
0x1b72   :  { %2362 = vsyncpa [#allocation6], 1 }
0x1b73   :  { %2363 = vsyncpa [#allocation9], 1 }
0x1b74   :  { %2364 = vsyncpa [#allocation12], 1 }
0x1b75   :  { %2365 = vsyncpa [#allocation15], 1 }
0x1b76   :  { %2366 = vsyncpa [#allocation4], 1 }
0x1b77   :  { %2368 = vsyncpa [#allocation4 + $0x1], 1 }

</bundles_post_ra>
